<compile_context>
chip_gen: v7x
topology: tpu7x:2x2x1
jax: 0.10.0
libtpu: 0.0.40
codegen_flags: <defaults>
</compile_context>

<pallas_src>
import jax
import jax.numpy as jnp
from jax.experimental import pallas as pl
from jax.experimental.pallas import tpu as pltpu


IN_DIM = 28 * 28      # 784 (full K dim of fc1; 8-aligned, no padding needed)
H1 = 512
H2 = 256
OUT_DIM = 10
OUT_PAD = 128         # lane-dense fc3 / softmax epilogue (unmasked vst)
NEG_BIG = -1.0e30     # bias value for padded fc3 lanes -> softmax prob ~ 0


def _round_up(a, m):
    return ((a + m - 1) // m) * m


def _cdiv(a, b):
    return -(-a // b)


def mnistnet_kernel(x_ref, w1_ref, b1_ref, w2_ref, b2_ref, w3_ref, b3_ref, o_ref):
    """Whole forward pass for one batch tile, entirely in VMEM.

    x_ref : (TB, 784) f32      w1: (784,512)  b1: (1,512)
    (cast to the weight        w2: (512,256)  b2: (1,256)
     dtype in-kernel)          w3: (256,128)  b3: (1,128)  (w3 zero-padded,
                                                            b3 padded with -1e30)
    o_ref : (TB, 128)  softmax probabilities in cols [0,10), ~0 elsewhere
    """
    # Cast activations to the MXU compute dtype inside the kernel (cheap VPU
    # op, hidden under the matmul) instead of a separate HBM pass outside.
    x = x_ref[...].astype(w1_ref.dtype)

    # fc1 + ReLU  (low-precision MXU inputs, f32 accumulation)
    h1 = jnp.dot(x, w1_ref[...], preferred_element_type=jnp.float32) + b1_ref[...]
    h1 = jnp.maximum(h1, 0.0)

    # fc2 + ReLU
    h2 = jnp.dot(h1.astype(w2_ref.dtype), w2_ref[...],
                 preferred_element_type=jnp.float32) + b2_ref[...]
    h2 = jnp.maximum(h2, 0.0)

    # fc3 (lane-dense: 128 output lanes, only the first 10 are real).
    # The -1e30 padding baked into b3 masks the padded lanes for the softmax,
    # so no explicit iota/where is needed here.
    logits = jnp.dot(h2.astype(w3_ref.dtype), w3_ref[...],
                     preferred_element_type=jnp.float32) + b3_ref[...]

    # softmax(dim=1)
    m = jnp.max(logits, axis=-1, keepdims=True)
    e = jnp.exp(logits - m)                 # padded lanes underflow to 0
    s = jnp.sum(e, axis=-1, keepdims=True)
    o_ref[...] = (e * pl.reciprocal(s, approx=True)).astype(o_ref.dtype)


def prepare_params(params, compute_dtype=jnp.bfloat16):
    """One-time weight packing (do NOT call per forward pass).

    * weights cast to `compute_dtype` (biases stay f32),
    * fc3 weight zero-padded 10 -> 128 output lanes,
    * fc3 bias padded with -1e30 so the padded lanes vanish in the softmax.
    """
    w1, b1, w2, b2, w3, b3 = params
    w1c = w1.astype(compute_dtype)                                        # (784, 512)
    w2c = w2.astype(compute_dtype)                                        # (512, 256)
    w3p = jnp.pad(w3.astype(compute_dtype), ((0, 0), (0, OUT_PAD - OUT_DIM)))
    b3p = jnp.pad(b3, ((0, 0), (0, OUT_PAD - OUT_DIM)), constant_values=NEG_BIG)
    return (w1c, b1, w2c, b2, w3p, b3p)


def _choose_batch_tiling(B, batch_tile):
    """Near-equal batch tiles; force >= 2 grid steps when B is big enough so
    both v7x TensorCores get work (no effect on 1-TC v5e/v6e)."""
    n_tiles = _cdiv(B, batch_tile)
    if n_tiles < 2 and B >= 16:
        n_tiles = 2
    tb = _round_up(_cdiv(B, n_tiles), 8)
    return tb, n_tiles


def mnistnet_forward(x_nchw, packed_params, *, batch_tile=512):
    """x_nchw: (B, 1, 28, 28) f32; packed_params from prepare_params.
    Returns (B, 10) f32 softmax probabilities."""
    w1, b1, w2, b2, w3, b3 = packed_params
    compute_dtype = w1.dtype

    B = x_nchw.shape[0]
    x = x_nchw.reshape(B, IN_DIM)                 # == x.view(-1, 28*28), stays f32

    tb, n_tiles = _choose_batch_tiling(B, batch_tile)
    B_pad = tb * n_tiles
    if B_pad != B:
        x = jnp.pad(x, ((0, B_pad - B), (0, 0)))
    grid = (n_tiles,)

    # Weights / biases are replicated for every batch tile (index_map -> block 0),
    # so they stay VMEM-resident across the whole grid.
    rep2d = lambda i: (0, 0)

    out = pl.pallas_call(
        mnistnet_kernel,
        out_shape=jax.ShapeDtypeStruct((B_pad, OUT_PAD), compute_dtype),
        grid_spec=pltpu.PrefetchScalarGridSpec(
            num_scalar_prefetch=0,
            grid=grid,
            in_specs=[
                pl.BlockSpec((tb, IN_DIM), lambda i: (i, 0)),    # x tile (full K)
                pl.BlockSpec((IN_DIM, H1), rep2d),               # w1
                pl.BlockSpec((1, H1), rep2d),                    # b1
                pl.BlockSpec((H1, H2), rep2d),                   # w2
                pl.BlockSpec((1, H2), rep2d),                    # b2
                pl.BlockSpec((H2, OUT_PAD), rep2d),              # w3 (lane-padded)
                pl.BlockSpec((1, OUT_PAD), rep2d),               # b3 (-1e30 padded)
            ],
            out_specs=pl.BlockSpec((tb, OUT_PAD), lambda i: (i, 0)),
        ),
        compiler_params=pltpu.CompilerParams(
            dimension_semantics=("parallel",),        # batch tiles split across TCs
            vmem_limit_bytes=32 * 1024 * 1024,        # explicit budget, ample here
        ),
    )(x, w1, b1, w2, b2, w3, b3)

    # Slice away batch padding + the 118 padded lanes; return f32 probabilities.
    return out[:B, :OUT_DIM].astype(jnp.float32)


def init_params(key):
    """Deterministic init mimicking PyTorch nn.Linear default
    (U[-1/sqrt(fan_in), +1/sqrt(fan_in)]).  Weights are stored as
    (in_features, out_features), i.e. PyTorch weight.T."""
    ks = jax.random.split(key, 6)

    def linear(kw, kb, fan_in, fan_out):
        bound = 1.0 / jnp.sqrt(fan_in)
        w = jax.random.uniform(kw, (fan_in, fan_out), jnp.float32, -bound, bound)
        b = jax.random.uniform(kb, (1, fan_out), jnp.float32, -bound, bound)
        return w, b

    w1, b1 = linear(ks[0], ks[1], IN_DIM, H1)
    w2, b2 = linear(ks[2], ks[3], H1, H2)
    w3, b3 = linear(ks[4], ks[5], H2, OUT_DIM)
    return (w1, b1, w2, b2, w3, b3)


def reference_forward(x_nchw, params):
    """Pure-JAX f32 reference matching the PyTorch forward."""
    w1, b1, w2, b2, w3, b3 = params
    x = x_nchw.reshape(x_nchw.shape[0], IN_DIM)
    h1 = jax.nn.relu(x @ w1 + b1)
    h2 = jax.nn.relu(h1 @ w2 + b2)
    return jax.nn.softmax(h2 @ w3 + b3, axis=1)


if __name__ == "__main__":
    key = jax.random.PRNGKey(0)
    k_params, k_x = jax.random.split(key)

    params = init_params(k_params)
    # Small MNIST-like NCHW batch; B=37 is deliberately NOT 8-aligned and not a
    # tile multiple, exercising batch padding and the >=2-grid-step split.
    B = 37
    x = jax.random.normal(k_x, (B, 1, 28, 28), dtype=jnp.float32)

    ref = reference_forward(x, params)

    # Fast path: bf16 MXU inputs, f32 accumulation, bf16 output writeback.
    packed_bf16 = prepare_params(params, jnp.bfloat16)
    out_bf16 = jax.block_until_ready(mnistnet_forward(x, packed_bf16))
    assert out_bf16.shape == (B, OUT_DIM)
    assert jnp.allclose(out_bf16, ref, atol=3e-2), "bf16 path mismatch"
    assert jnp.allclose(jnp.sum(out_bf16, axis=1), jnp.ones(B), atol=1e-2)

    # f32 path sanity check (same kernel, no low-precision cast).  Tolerance
    # covers the ~2^-12 relative error of the approx EUP reciprocal.
    packed_f32 = prepare_params(params, jnp.float32)
    out_f32 = jax.block_until_ready(mnistnet_forward(x, packed_f32))
    assert jnp.allclose(out_f32, ref, atol=5e-3), "f32 path mismatch"
    assert jnp.allclose(jnp.sum(out_f32, axis=1), jnp.ones(B), atol=5e-3)

    print("KERNEL_OK")
</pallas_src>

<mosaic_0001>
module attributes {stable_mosaic.version = 11 : i64} {
  func.func @mnistnet_kernel(%arg0: i32, %arg1: memref<24x784xf32, #tpu.memory_space<vmem>>, %arg2: memref<784x512xbf16, #tpu.memory_space<vmem>>, %arg3: memref<1x512xf32, #tpu.memory_space<vmem>>, %arg4: memref<512x256xbf16, #tpu.memory_space<vmem>>, %arg5: memref<1x256xf32, #tpu.memory_space<vmem>>, %arg6: memref<256x128xbf16, #tpu.memory_space<vmem>>, %arg7: memref<1x128xf32, #tpu.memory_space<vmem>>, %arg8: memref<24x128xbf16, #tpu.memory_space<vmem>>) attributes {dimension_semantics = [#tpu.dimension_semantics<parallel>], iteration_bounds = array<i64: 2>, scalar_prefetch = 0 : i64, scratch_operands = 0 : i64, tpu.core_type = #tpu.core_type<tc>, window_params = [{transform_indices = @transform_0, window_bounds = array<i64: 24, 784>}, {pipeline_mode = #tpu.pipeline_mode<synchronous>, transform_indices = @transform_1, window_bounds = array<i64: 784, 512>}, {pipeline_mode = #tpu.pipeline_mode<synchronous>, transform_indices = @transform_2, window_bounds = array<i64: 1, 512>}, {pipeline_mode = #tpu.pipeline_mode<synchronous>, transform_indices = @transform_3, window_bounds = array<i64: 512, 256>}, {pipeline_mode = #tpu.pipeline_mode<synchronous>, transform_indices = @transform_4, window_bounds = array<i64: 1, 256>}, {pipeline_mode = #tpu.pipeline_mode<synchronous>, transform_indices = @transform_5, window_bounds = array<i64: 256, 128>}, {pipeline_mode = #tpu.pipeline_mode<synchronous>, transform_indices = @transform_6, window_bounds = array<i64: 1, 128>}, {transform_indices = @transform_7, window_bounds = array<i64: 24, 128>}]} {
    %c0 = arith.constant 0 : index
    %c0_0 = arith.constant 0 : index
    %0 = vector.load %arg1[%c0, %c0_0] : memref<24x784xf32, #tpu.memory_space<vmem>>, vector<24x784xf32>
    %1 = arith.truncf %0 : vector<24x784xf32> to vector<24x784xbf16>
    %c0_1 = arith.constant 0 : index
    %c0_2 = arith.constant 0 : index
    %2 = vector.load %arg2[%c0_1, %c0_2] : memref<784x512xbf16, #tpu.memory_space<vmem>>, vector<784x512xbf16>
    %cst = arith.constant dense<0.000000e+00> : vector<24x512xf32>
    %3 = tpu.matmul %1, %2, %cst {dimension_numbers = #tpu.dot_dimension_numbers<[1], [0], [0], [1], [0, 0, 1, 1], [], []>} : vector<24x784xbf16>, vector<784x512xbf16>, vector<24x512xf32> -> vector<24x512xf32>
    %c0_3 = arith.constant 0 : index
    %c0_4 = arith.constant 0 : index
    %4 = vector.load %arg3[%c0_3, %c0_4] : memref<1x512xf32, #tpu.memory_space<vmem>>, vector<1x512xf32>
    %5 = vector.broadcast %4 : vector<1x512xf32> to vector<24x512xf32>
    %6 = arith.addf %3, %5 : vector<24x512xf32>
    %cst_5 = arith.constant 0.000000e+00 : f32
    %7 = vector.broadcast %cst_5 : f32 to vector<24x512xf32>
    %8 = arith.maximumf %6, %7 : vector<24x512xf32>
    %9 = arith.truncf %8 : vector<24x512xf32> to vector<24x512xbf16>
    %c0_6 = arith.constant 0 : index
    %c0_7 = arith.constant 0 : index
    %10 = vector.load %arg4[%c0_6, %c0_7] : memref<512x256xbf16, #tpu.memory_space<vmem>>, vector<512x256xbf16>
    %cst_8 = arith.constant dense<0.000000e+00> : vector<24x256xf32>
    %11 = tpu.matmul %9, %10, %cst_8 {dimension_numbers = #tpu.dot_dimension_numbers<[1], [0], [0], [1], [0, 0, 1, 1], [], []>} : vector<24x512xbf16>, vector<512x256xbf16>, vector<24x256xf32> -> vector<24x256xf32>
    %c0_9 = arith.constant 0 : index
    %c0_10 = arith.constant 0 : index
    %12 = vector.load %arg5[%c0_9, %c0_10] : memref<1x256xf32, #tpu.memory_space<vmem>>, vector<1x256xf32>
    %13 = vector.broadcast %12 : vector<1x256xf32> to vector<24x256xf32>
    %14 = arith.addf %11, %13 : vector<24x256xf32>
    %cst_11 = arith.constant 0.000000e+00 : f32
    %15 = vector.broadcast %cst_11 : f32 to vector<24x256xf32>
    %16 = arith.maximumf %14, %15 : vector<24x256xf32>
    %17 = arith.truncf %16 : vector<24x256xf32> to vector<24x256xbf16>
    %c0_12 = arith.constant 0 : index
    %c0_13 = arith.constant 0 : index
    %18 = vector.load %arg6[%c0_12, %c0_13] : memref<256x128xbf16, #tpu.memory_space<vmem>>, vector<256x128xbf16>
    %cst_14 = arith.constant dense<0.000000e+00> : vector<24x128xf32>
    %19 = tpu.matmul %17, %18, %cst_14 {dimension_numbers = #tpu.dot_dimension_numbers<[1], [0], [0], [1], [0, 0, 1, 1], [], []>} : vector<24x256xbf16>, vector<256x128xbf16>, vector<24x128xf32> -> vector<24x128xf32>
    %c0_15 = arith.constant 0 : index
    %c0_16 = arith.constant 0 : index
    %20 = vector.load %arg7[%c0_15, %c0_16] : memref<1x128xf32, #tpu.memory_space<vmem>>, vector<1x128xf32>
    %21 = vector.broadcast %20 : vector<1x128xf32> to vector<24x128xf32>
    %22 = arith.addf %19, %21 : vector<24x128xf32>
    %cst_17 = arith.constant dense<0xFF800000> : vector<24xf32>
    %23 = vector.multi_reduction <maximumf>, %22, %cst_17 [1] : vector<24x128xf32> to vector<24xf32>
    %24 = vector.shape_cast %23 : vector<24xf32> to vector<24x1xf32>
    %25 = vector.broadcast %24 : vector<24x1xf32> to vector<24x128xf32>
    %26 = arith.subf %22, %25 : vector<24x128xf32>
    %27 = math.exp %26 : vector<24x128xf32>
    %cst_18 = arith.constant dense<0.000000e+00> : vector<24xf32>
    %28 = vector.multi_reduction <add>, %27, %cst_18 [1] : vector<24x128xf32> to vector<24xf32>
    %29 = vector.shape_cast %28 : vector<24xf32> to vector<24x1xf32>
    %30 = tpu.reciprocal %29 {approx = true} : vector<24x1xf32> -> vector<24x1xf32>
    %31 = vector.broadcast %30 : vector<24x1xf32> to vector<24x128xf32>
    %32 = arith.mulf %27, %31 : vector<24x128xf32>
    %33 = arith.truncf %32 : vector<24x128xf32> to vector<24x128xbf16>
    %c0_19 = arith.constant 0 : index
    %c0_20 = arith.constant 0 : index
    %34 = vector.load %arg8[%c0_19, %c0_20] : memref<24x128xbf16, #tpu.memory_space<vmem>>, vector<24x128xbf16>
    tpu.vector_store %arg8[%c0_19, %c0_20], %33 {strides = array<i32>} : memref<24x128xbf16, #tpu.memory_space<vmem>>, vector<24x128xbf16>,
    return
  }
  func.func @transform_0(%arg0: i32) -> (i32, i32) {
    %c0_i32 = arith.constant 0 : i32
    %c0_i32_0 = arith.constant 0 : i32
    return %arg0, %c0_i32 : i32, i32
  }
  func.func @transform_1(%arg0: i32) -> (i32, i32) {
    %c0_i32 = arith.constant 0 : i32
    %c0_i32_0 = arith.constant 0 : i32
    %c0_i32_1 = arith.constant 0 : i32
    return %c0_i32, %c0_i32_0 : i32, i32
  }
  func.func @transform_2(%arg0: i32) -> (i32, i32) {
    %c0_i32 = arith.constant 0 : i32
    %c0_i32_0 = arith.constant 0 : i32
    %c0_i32_1 = arith.constant 0 : i32
    return %c0_i32, %c0_i32_0 : i32, i32
  }
  func.func @transform_3(%arg0: i32) -> (i32, i32) {
    %c0_i32 = arith.constant 0 : i32
    %c0_i32_0 = arith.constant 0 : i32
    %c0_i32_1 = arith.constant 0 : i32
    return %c0_i32, %c0_i32_0 : i32, i32
  }
  func.func @transform_4(%arg0: i32) -> (i32, i32) {
    %c0_i32 = arith.constant 0 : i32
    %c0_i32_0 = arith.constant 0 : i32
    %c0_i32_1 = arith.constant 0 : i32
    return %c0_i32, %c0_i32_0 : i32, i32
  }
  func.func @transform_5(%arg0: i32) -> (i32, i32) {
    %c0_i32 = arith.constant 0 : i32
    %c0_i32_0 = arith.constant 0 : i32
    %c0_i32_1 = arith.constant 0 : i32
    return %c0_i32, %c0_i32_0 : i32, i32
  }
  func.func @transform_6(%arg0: i32) -> (i32, i32) {
    %c0_i32 = arith.constant 0 : i32
    %c0_i32_0 = arith.constant 0 : i32
    %c0_i32_1 = arith.constant 0 : i32
    return %c0_i32, %c0_i32_0 : i32, i32
  }
  func.func @transform_7(%arg0: i32) -> (i32, i32) {
    %c0_i32 = arith.constant 0 : i32
    %c0_i32_0 = arith.constant 0 : i32
    return %arg0, %c0_i32 : i32, i32
  }
}

</mosaic_0001>

<bundles_post_ra>
// kernel: tpu_custom_call.1
= control target key start
LH: loop header
LB: loop body
LE: loop exit
PB: predicated region body
PF: predicated region fallthrough
CT: control target
= control target key end

     0   :  { %s4404_s0 = inlined_call_operand.hbm [shape: f32[48,784], index: 0, kind: input, shape index: {}]   ;;  %s4405_s1 = inlined_call_operand.hbm [shape: bf16[784,512], index: 1, kind: input, shape index: {}]   ;;  %s4406_s2 = inlined_call_operand.vmem [shape: f32[1,512], index: 2, kind: input, shape index: {}]   ;;  %s4407_s3 = inlined_call_operand.hbm [shape: bf16[512,256], index: 3, kind: input, shape index: {}]   ;;  %s4408_s4 = inlined_call_operand.vmem [shape: f32[1,256], index: 4, kind: input, shape index: {}]   ;;  %s4409_s5 = inlined_call_operand.hbm [shape: bf16[256,128], index: 5, kind: input, shape index: {}]   ;;  %s4410_s6 = inlined_call_operand.vmem [shape: f32[1,128], index: 6, kind: input, shape index: {}]   ;;  %s4411_s7 = inlined_call_operand.hbm [shape: bf16[48,128], index: 7, kind: output, shape index: {}]  }
   0x1   :  { %4415 = sst [smem:[#allocation15_spill]] %s4405_s1 }
   0x2   :  { %12 = vsyncpa [#allocation3], 0 }
   0x3   :  { %14 = vsyncpa [#allocation3 + $0x1], 0 }
   0x4   :  { %15 = vsyncpa [#allocation6], 0 }
   0x5   :  { %16 = vsyncpa [#allocation9], 0 }
   0x6   :  { %17 = vsyncpa [#allocation4], 0 }
   0x7   :  { %19 = vsyncpa [#allocation4 + $0x1], 0  ;;  %s4025_s24 = smov 0   ;;  %s4027_s25 = smov 0  }
   0x8   :  { %s4029_s26 = smov 0   ;;  %s4031_s27 = smov 0  }
   0x9 LB: > { %s4046_s28 = sadd.s32 4294967295, %s3967_s27   ;;  %s2863_s29 = sadd.s32 4294967294, %s3967_s27   ;;  %s3967_s27 = sphi %s4031_s27, %s4436_s27   ;;  %s3963_s26 = sphi %s4029_s26, %s4435_s26   ;;  %s3959_s25 = sphi %s4027_s25, %s4434_s25   ;;  %s3955_s24 = sphi %s4025_s24, %s4433_s24  }
   0xa   : > { %p45_p0 = scmp.ne.s32.totalorder %s3959_s25, %s3955_s24  ;;  %p4412_p1 = scmp.eq.s32.totalorder %s4046_s28, 0 }
   0xb   : > { %p201_p3 = scmp.eq.s32.totalorder %s2863_s29, 1  ;;  %p2864_p5 = scmp.ge.s32.totalorder %s3967_s27, 1 }
   0xc   : > { %p4055_p4 = por %p4412_p1, %p45_p0  ;;  %p208_p7 = scmp.lt.s32.totalorder %s3967_s27, 3 }
   0xd   : > { %p4060_p6 = por %p201_p3, %p45_p0  ;;  %s3969_s10 = smov [#allocation5]  }
   0xe   : > { %s4416_s30 = scalar_select %p4055_p4, 1, 0 }
   0xf   : > { %s4417_s8 = scalar_select %p4060_p6, 1, 0 }
  0x10   : > { %p4065_p8 = pnand %p2864_p5, %p208_p7  ;;  %s220_s11 = sshll.u32 %s3969_s10, 4  ;;  %s4069_s11 = int_to_ptr.vmem [resolvable:$true] %s220_s11 }
  0x11   : > { %s3970_s13 = smov [#allocation7]   ;;  %s4420_s1 = sld [smem:[#allocation15_spill]] }
  0x12   : > { %s4418_s9 = scalar_select %p4065_p8, 1, 0 }
  0x13   : > { %p3288_p9 = pneg %p4065_p8  ;;  %s236_s14 = sshll.u32 %s3970_s13, 4  ;;  %s4080_s14 = int_to_ptr.vmem [resolvable:$true] %s236_s14 }
  0x15   : > { %p4076_p11 = pnand %p3288_p9, %p4412_p1 }
  0x17   : > { %s3779_s17 = scalar_lea.hbm %s4420_s1, 25088  ;;  %p4090_p13 = pneg %p4076_p11 }
  0x18   : > { %p3780_p12 = scmp.ne.s32.totalorder %s4420_s1, %s3779_s17  ;;  %p3786_p5 = scmp.lt.u32.totalorder %s3779_s17, %s4420_s1 }
  0x1a   : > { %p3782_p0 = pnand %p4090_p13, %p3780_p12 }
  0x1c   : > { %p3783_p3 = pneg %p3782_p0 }
  0x1e   : > { %p3788_p7 = pnand %p3786_p5, %p3783_p3 }
  0x20   : > { %3791 = shalt.err (!%p3788_p7)
}
  0x21   : > { %s3792_s23 = scalar_lea.vmem %s4069_s11, 25088  ;;  %p3800_p2 = scmp.lt.s32.totalorder %s4069_s11, %s4069_s11 }
  0x22   : > { %p3793_p9 = scmp.ne.s32.totalorder %s4069_s11, %s3792_s23  ;;  %p3801_p6 = scmp.lt.s32.totalorder %s3792_s23, %s3792_s23 }
  0x24   : > { %p3795_p10 = pnand %p3793_p9, %p4090_p13  ;;  %p3802_p12 = por %p3801_p6, %p3800_p2 }
  0x26   : > { %p3796_p1 = pneg %p3795_p10 }
  0x28   : > { %p3803_p0 = pnand %p3802_p12, %p3796_p1 }
  0x2a   : > { %3806 = shalt.err (!%p3803_p0)
}
  0x2b   : > { %s3971_s29 = smov 256   ;;  %s3972_s10 = smov 16  }
  0x2c   : > { %3291 = dma.hbm_to_vmem [thread:$0]  (!%p4076_p11), %s4420_s1, 25088, %s4069_s11, [#allocation6], %s3971_s29, %s3971_s29, %s3972_s10  }
  0x2d   : > { %s3807_s18 = scalar_lea.hbm %s4407_s3, 8192 }
  0x2e   : > { %p3808_p2 = scmp.ne.s32.totalorder %s4407_s3, %s3807_s18  ;;  %p3814_p10 = scmp.lt.u32.totalorder %s3807_s18, %s4407_s3 }
  0x30   : > { %p3810_p1 = pnand %p3808_p2, %p4090_p13 }
  0x32   : > { %p3811_p6 = pneg %p3810_p1 }
  0x34   : > { %p3816_p3 = pnand %p3814_p10, %p3811_p6 }
  0x36   : > { %3819 = shalt.err (!%p3816_p3)
}
  0x37   : > { %s3820_s11 = scalar_lea.vmem %s4080_s14, 8192  ;;  %p3828_p12 = scmp.lt.s32.totalorder %s4080_s14, %s4080_s14 }
  0x38   : > { %p3821_p5 = scmp.ne.s32.totalorder %s4080_s14, %s3820_s11  ;;  %p3829_p0 = scmp.lt.s32.totalorder %s3820_s11, %s3820_s11 }
  0x3a   : > { %p3823_p7 = pnand %p3821_p5, %p4090_p13  ;;  %p3830_p2 = por %p3829_p0, %p3828_p12 }
  0x3c   : > { %p3824_p9 = pneg %p3823_p7 }
  0x3e   : > { %p3831_p1 = pnand %p3830_p2, %p3824_p9 }
  0x40   : > { %3834 = shalt.err (!%p3831_p1)
}
  0x41   : > { %s3973_s29 = smov 128   ;;  %s3974_s10 = smov 8  }
  0x42   : > { %3294 = dma.hbm_to_vmem [thread:$0]  (!%p4076_p11), %s4407_s3, 8192, %s4080_s14, [#allocation6], %s3973_s29, %s3973_s29, %s3974_s10  }
  0x43   : > { %s3975_s16 = smov [#allocation8]   ;;  %s3835_s21 = scalar_lea.hbm %s4409_s5, 2048 }
  0x44   : > { %s252_s17 = sshll.u32 %s3975_s16, 4  ;;  %p3836_p6 = scmp.ne.s32.totalorder %s4409_s5, %s3835_s21  ;;  %s253_s17 = int_to_ptr.vmem [resolvable:$true] %s252_s17 }
  0x45   : > { %p3842_p5 = scmp.lt.u32.totalorder %s3835_s21, %s4409_s5 }
  0x46   : > { %p3838_p10 = pnand %p3836_p6, %p4090_p13 }
  0x48   : > { %p3839_p3 = pneg %p3838_p10 }
  0x4a   : > { %p3844_p7 = pnand %p3842_p5, %p3839_p3 }
  0x4c   : > { %3847 = shalt.err (!%p3844_p7)
}
  0x4d   : > { %s3848_s14 = scalar_lea.vmem %s253_s17, 2048  ;;  %p3856_p2 = scmp.lt.s32.totalorder %s253_s17, %s253_s17 }
  0x4e   : > { %p3849_p9 = scmp.ne.s32.totalorder %s253_s17, %s3848_s14  ;;  %p3857_p1 = scmp.lt.s32.totalorder %s3848_s14, %s3848_s14 }
  0x50   : > { %p3851_p12 = pnand %p3849_p9, %p4090_p13  ;;  %p3858_p4 = por %p3857_p1, %p3856_p2 }
  0x52   : > { %p3852_p0 = pneg %p3851_p12 }
  0x54   : > { %p3859_p8 = pnand %p3858_p4, %p3852_p0 }
  0x56   : > { %3862 = shalt.err (!%p3859_p8)
}
  0x57   : > { %s3976_s29 = smov 64   ;;  %s3977_s1 = smov 4  }
  0x58   : > { %3297 = dma.hbm_to_vmem [thread:$0]  (!%p4076_p11), %s4409_s5, 2048, %s253_s17, [#allocation9], %s3976_s29, %s3976_s29, %s3977_s1  }
  0x59   : > { %s4153_s13 = sadd.s32 1, %s3967_s27   ;;  %s32_s16 = sadd.s32 1, %s3963_s26 }
  0x5a   : > { %s29_s15 = ssub.s32 %s3967_s27, %s4153_s13  ;;  %p39_p8 = scmp.ne.s32.totalorder %s3963_s26, %s3959_s25 }
  0x5b   : > { %p30_p4 = scmp.eq.s32.totalorder %s29_s15, 0  ;;  %p40_p13 = scmp.eq.s32.totalorder %s3967_s27, 0 }
  0x5c   : > { %p4422_p10 = scmp.eq.s32.totalorder %s4046_s28, 1  ;;  %p3309_p5 = scmp.lt.s32.totalorder %s3967_s27, 2 }
  0x5d   : > { %s4162_s18 = scalar_select %p30_p4, %s3963_s26, %s32_s16  }
  0x5e   : > { %p41_p6 = por %p40_p13, %p39_p8  ;;  %p4166_p3 = por %p4422_p10, %p39_p8 }
  0x5f   : > { %s269_s12 = sand.u32 1, %s3963_s26   ;;  %s3310_s17 = smul.u32 2688, %s3967_s27 }
  0x60   : > { %s3268_s21 = smul.u32 168, %s269_s12  ;;  %p4173_p11 = pnand %p3309_p5, %p41_p6 }
  0x61   : > { %s4180_s14 = scalar_lea.hbm %s4404_s0, %s3310_s17  ;;  %s4184_s20 = scalar_lea.sflag [#allocation3], %s269_s12 }
  0x62   : > { %s273_s29 = scalar_lea.vmem [#allocation2], %s3268_s21  ;;  %s3863_s10 = scalar_lea.hbm %s4180_s14, 2688 }
  0x63   : > { %s281_s1 = sshll.u32 %s273_s29, 4  ;;  %p3864_p7 = scmp.ne.s32.totalorder %s4180_s14, %s3863_s10  ;;  %s4182_s1 = int_to_ptr.vmem [resolvable:$true] %s281_s1 }
  0x64   : > { %p3865_p9 = pneg %p4173_p11  ;;  %s3868_s17 = scalar_lea.hbm %s4404_s0, 5376 }
  0x65   : > { %p3869_p2 = scmp.lt.u32.totalorder %s4180_s14, %s4404_s0  ;;  %p3870_p1 = scmp.lt.u32.totalorder %s3868_s17, %s3863_s10 }
  0x66   : > { %p3866_p12 = pnand %p3865_p9, %p3864_p7  ;;  %p3872_p8 = scmp.lt.u32.totalorder %s3863_s10, %s4180_s14 }
  0x67   : > { %p3871_p4 = por %p3870_p1, %p3869_p2 }
  0x68   : > { %p3867_p0 = pneg %p3866_p12 }
  0x69   : > { %p3873_p13 = por %p3872_p8, %p3871_p4 }
  0x6b   : > { %p3874_p6 = pnand %p3873_p13, %p3867_p0 }
  0x6d   : > { %3877 = shalt.err (!%p3874_p6)
}
  0x6e   : > { %s3878_s12 = scalar_lea.vmem %s4182_s1, 2688  ;;  %s3978_s21 = smov [#allocation2]  }
  0x6f   : > { %p3879_p10 = scmp.ne.s32.totalorder %s4182_s1, %s3878_s12  ;;  %s3883_s29 = sshll.u32 %s3978_s21, 4  ;;  %s3884_s29 = int_to_ptr.vmem [resolvable:$false] %s3883_s29 }
  0x70   : > { %s3885_s15 = scalar_lea.vmem %s3884_s29, 5376  ;;  %p3886_p12 = scmp.lt.s32.totalorder %s4182_s1, %s3884_s29 }
  0x71   : > { %p3881_p5 = pnand %p3879_p10, %p3865_p9  ;;  %p3887_p2 = scmp.lt.s32.totalorder %s3885_s15, %s3878_s12 }
  0x73   : > { %p3882_p7 = pneg %p3881_p5  ;;  %p3888_p1 = por %p3887_p2, %p3886_p12 }
  0x75   : > { %p3889_p4 = pnand %p3888_p1, %p3882_p7 }
  0x77   : > { %3892 = shalt.err (!%p3889_p4)
}
  0x78   : > { %s3979_s10 = smov 896   ;;  %s3980_s16 = smov 56  }
  0x79   : > { %3301 = dma.hbm_to_vmem [thread:$0]  (!%p4173_p11), %s4180_s14, 2688, %s4182_s1, %s4184_s20, %s3979_s10, %s3979_s10, %s3980_s16  }
  0x7a   : > { %p4425_p9 = scmp.ne.s32.totalorder %s4418_s9, 0 }
  0x7b   : > { %s4215_s17 = sand.u32 (!%p4425_p9), 1, %s3959_s25   ;;  %p4426_p0 = scmp.ne.s32.totalorder (!%p4425_p9), %s4416_s30, 0 }
  0x7c   : > { %293 = sbr.rel (%p4425_p9) target bundleno = 1396 (0x574), region = 48  ;;  %s296_s11 = scalar_lea.sflag (!%p4425_p9), [#allocation3], %s4215_s17 }
  0x7d   : > { %s3270_s23 = smul.u32 (!%p4425_p9), 168, %s4215_s17 }
  0x7f   : > { %s4219_s12 = scalar_lea.vmem (!%p4425_p9), [#allocation2], %s3270_s23 }
  0x83   : > { %3938 = dma.done.wait (%p4426_p0), %s296_s11, 2688  }
  0x84   : > { %3940 = vsyncadd (%p4426_p0), %s296_s11, 4294964608  ;;  %p4427_p11 = scmp.eq.s32.totalorder %s4046_s28, 0 }
  0x86   : > { %3942 = dma.done.wait (%p4427_p11), [#allocation6], 33280   ;;  %p4428_p8 = pmov %p4427_p11 }
  0x88   : > { %3944 = vsyncadd (%p4428_p8), [#allocation6], 4294934016  ;;  %p4429_p13 = pmov %p4428_p8 }
  0x89   : > { %p4430_p6 = pmov %p4428_p8 }
  0x8a   : > { %3946 = dma.done.wait (%p4429_p13), [#allocation9], 2048  }
  0x8b   : > { %3948 = vsyncadd (%p4430_p6), [#allocation9], 4294965248  ;;  %v3361_v0 = vld [vmem:[#allocation5 + $0x4] ss:$16 sps:$4 sm:$0xff]   ;;  %v3365_v2 = vld [vmem:[#allocation5] ss:$16 sps:$4 sm:$0xff]  }
  0x8c   : > { %v3363_v1 = vld [vmem:[#allocation5 + $0x204] ss:$16 sps:$4 sm:$0xff]   ;;  %1585 = vmatprep.subr.bf16.mxu1 %v3361_v0  ;;  %v3366_v3 = vld [vmem:[#allocation5 + $0x200] ss:$16 sps:$4 sm:$0xff]   ;;  %vm1578_vm0 = vcmask 130048   ;;  %s3271_s21 = smul.u32 12, %s4215_s17 }
  0x8d   : > { %1636 = vmatprep.subr.bf16.mxu0 %v3363_v1  ;;  %v3367_v4 = vld [vmem:[#allocation5 + $0x24] ss:$16 sps:$4 sm:$0xff]   ;;  %1586 = vmatpush1.bf16.msra.mxu1 %v3365_v2  ;;  %v3371_v6 = vld [vmem:[#allocation5 + $0x20] ss:$16 sps:$4 sm:$0xff]   ;;  %s3164_s29 = smul.u32 192, %s4046_s28  ;;  %s3982_s30 = smov [#allocation10]  }
  0x8e   : > { %1637 = vmatpush1.bf16.msra.mxu0 %v3366_v3  ;;  %v3369_v5 = vld [vmem:[#allocation5 + $0x224] ss:$16 sps:$4 sm:$0xff]   ;;  %1587 = vmatprep.subr.bf16.mxu1 %v3367_v4  ;;  %v3372_v7 = vld [vmem:[#allocation5 + $0x220] ss:$16 sps:$4 sm:$0xff]   ;;  %s341_s15 = scalar_lea.vmem [#allocation10], %s3271_s21  ;;  %s3897_s9 = sshll.u32 %s3982_s30, 4  ;;  %s3898_s9 = int_to_ptr.vmem [resolvable:$false] %s3897_s9 }
  0x8f   : > { %1638 = vmatprep.subr.bf16.mxu0 %v3369_v5  ;;  %v3373_v8 = vld [vmem:[#allocation5 + $0x44] ss:$16 sps:$4 sm:$0xff]   ;;  %v3377_v10 = vld [vmem:[#allocation5 + $0x40] ss:$16 sps:$4 sm:$0xff]   ;;  %s2761_s10 = sshll.u32 %s341_s15, 4  ;;  %s4358_s11 = scalar_lea.hbm %s4411_s7, %s3164_s29  ;;  %s4360_s10 = int_to_ptr.vmem [resolvable:$true] %s2761_s10 }
  0x90   : > { %v3375_v9 = vld [vmem:[#allocation5 + $0x244] ss:$16 sps:$4 sm:$0xff]   ;;  %v3378_v11 = vld [vmem:[#allocation5 + $0x240] ss:$16 sps:$4 sm:$0xff]   ;;  %s3893_s28 = scalar_lea.vmem %s4360_s10, 192  ;;  %s3899_s22 = scalar_lea.vmem %s3898_s9, 384 }
  0x91   : > { %1588 = vmatpush1.bf16.msra.mxu1 %v3371_v6  ;;  %v3379_v12 = vld [vmem:[#allocation5 + $0x64] ss:$16 sps:$4 sm:$0xff]   ;;  %v3383_v14 = vld [vmem:[#allocation5 + $0x60] ss:$16 sps:$4 sm:$0xff]   ;;  %p3894_p10 = scmp.ne.s32.totalorder %s4360_s10, %s3893_s28  ;;  %p3900_p12 = scmp.lt.s32.totalorder %s4360_s10, %s3898_s9 }
  0x92   : > { %1639 = vmatpush1.bf16.msra.mxu0 %v3372_v7  ;;  %1589 = vmatprep.subr.bf16.mxu1 %v3373_v8  ;;  %v3381_v13 = vld [vmem:[#allocation5 + $0x264] ss:$16 sps:$4 sm:$0xff]   ;;  %v3384_v15 = vld [vmem:[#allocation5 + $0x260] ss:$16 sps:$4 sm:$0xff]   ;;  %p3901_p2 = scmp.lt.s32.totalorder %s3899_s22, %s3893_s28 }
  0x93   : > { %1640 = vmatprep.subr.bf16.mxu0 %v3375_v9  ;;  %v3385_v16 = vld [vmem:[#allocation5 + $0x84] ss:$16 sps:$4 sm:$0xff]   ;;  %v3389_v18 = vld [vmem:[#allocation5 + $0x80] ss:$16 sps:$4 sm:$0xff]   ;;  %p3895_p5 = pnand %p3894_p10, %p4166_p3 }
  0x94   : > { %v3387_v17 = vld [vmem:[#allocation5 + $0x284] ss:$16 sps:$4 sm:$0xff]   ;;  %v3390_v19 = vld [vmem:[#allocation5 + $0x280] ss:$16 sps:$4 sm:$0xff]   ;;  %p3902_p1 = por %p3901_p2, %p3900_p12 }
  0x95   : > { %1590 = vmatpush1.bf16.msra.mxu1 %v3377_v10  ;;  %v3391_v20 = vld [vmem:[#allocation5 + $0xa4] ss:$16 sps:$4 sm:$0xff]   ;;  %v3395_v22 = vld [vmem:[#allocation5 + $0xa0] ss:$16 sps:$4 sm:$0xff]   ;;  %p3896_p7 = pneg %p3895_p5 }
  0x96   : > { %1641 = vmatpush1.bf16.msra.mxu0 %v3378_v11  ;;  %1591 = vmatprep.subr.bf16.mxu1 %v3379_v12  ;;  %v3393_v21 = vld [vmem:[#allocation5 + $0x2a4] ss:$16 sps:$4 sm:$0xff]   ;;  %v3396_v23 = vld [vmem:[#allocation5 + $0x2a0] ss:$16 sps:$4 sm:$0xff]   ;;  %v3462_v11 = vld [vmem:[#allocation5 + $0xc] ss:$16 sps:$4 sm:$0xff]  }
  0x97   : > { %1642 = vmatprep.subr.bf16.mxu0 %v3381_v13  ;;  %v3397_v24 = vld [vmem:[#allocation5 + $0xc4] ss:$16 sps:$4 sm:$0xff]   ;;  %v3401_v26 = vld [vmem:[#allocation5 + $0xc0] ss:$16 sps:$4 sm:$0xff]   ;;  %p3903_p4 = pnand %p3902_p1, %p3896_p7 }
  0x98   : > { %v3399_v25 = vld [vmem:[#allocation5 + $0x2c4] ss:$16 sps:$4 sm:$0xff]   ;;  %v3402_v27 = vld [vmem:[#allocation5 + $0x2c0] ss:$16 sps:$4 sm:$0xff]  }
  0x99   : > { %1592 = vmatpush1.bf16.msra.mxu1 %v3383_v14  ;;  %v3403_v28 = vld [vmem:[#allocation5 + $0xe4] ss:$16 sps:$4 sm:$0xff]   ;;  %v3407_v30 = vld [vmem:[#allocation5 + $0xe0] ss:$16 sps:$4 sm:$0xff]   ;;  %v3460_v14 = vld [vmem:[#allocation5 + $0x8] ss:$16 sps:$4 sm:$0xff]  }
  0x9a   : > { %1643 = vmatpush1.bf16.msra.mxu0 %v3384_v15  ;;  %1593 = vmatprep.subr.bf16.mxu1 %v3385_v16  ;;  %v3405_v29 = vld [vmem:[#allocation5 + $0x2e4] ss:$16 sps:$4 sm:$0xff]   ;;  %v3408_v31 = vld [vmem:[#allocation5 + $0x2e0] ss:$16 sps:$4 sm:$0xff]  }
  0x9b   : > { %1644 = vmatprep.subr.bf16.mxu0 %v3387_v17  ;;  %v3409_v32 = vld [vmem:[#allocation5 + $0x104] ss:$16 sps:$4 sm:$0xff]   ;;  %v3413_v34 = vld [vmem:[#allocation5 + $0x100] ss:$16 sps:$4 sm:$0xff]   ;;  %v3468_v17 = vld [vmem:[#allocation5 + $0x2c] ss:$16 sps:$4 sm:$0xff]  }
  0x9c   : > { %v3411_v33 = vld [vmem:[#allocation5 + $0x304] ss:$16 sps:$4 sm:$0xff]   ;;  %v3414_v35 = vld [vmem:[#allocation5 + $0x300] ss:$16 sps:$4 sm:$0xff]  }
  0x9d   : > { %1594 = vmatpush1.bf16.msra.mxu1 %v3389_v18  ;;  %v3415_v36 = vld [vmem:[#allocation5 + $0x124] ss:$16 sps:$4 sm:$0xff]   ;;  %v3419_v38 = vld [vmem:[#allocation5 + $0x120] ss:$16 sps:$4 sm:$0xff]  }
  0x9e   : > { %1645 = vmatpush1.bf16.msra.mxu0 %v3390_v19  ;;  %1595 = vmatprep.subr.bf16.mxu1 %v3391_v20  ;;  %v3417_v37 = vld [vmem:[#allocation5 + $0x324] ss:$16 sps:$4 sm:$0xff]   ;;  %v3420_v39 = vld [vmem:[#allocation5 + $0x320] ss:$16 sps:$4 sm:$0xff]   ;;  %v3466_v19 = vld [vmem:[#allocation5 + $0x28] ss:$16 sps:$4 sm:$0xff]  }
  0x9f   : > { %1646 = vmatprep.subr.bf16.mxu0 %v3393_v21  ;;  %v3421_v40 = vld [vmem:[#allocation5 + $0x144] ss:$16 sps:$4 sm:$0xff]   ;;  %v3425_v42 = vld [vmem:[#allocation5 + $0x140] ss:$16 sps:$4 sm:$0xff]   ;;  %v3474_v21 = vld [vmem:[#allocation5 + $0x4c] ss:$16 sps:$4 sm:$0xff]  }
  0xa0   : > { %v3423_v41 = vld [vmem:[#allocation5 + $0x344] ss:$16 sps:$4 sm:$0xff]   ;;  %v3426_v43 = vld [vmem:[#allocation5 + $0x340] ss:$16 sps:$4 sm:$0xff]  }
  0xa1   : > { %1596 = vmatpush1.bf16.msra.mxu1 %v3395_v22  ;;  %v3427_v44 = vld [vmem:[#allocation5 + $0x164] ss:$16 sps:$4 sm:$0xff]   ;;  %v3431_v47 = vld [vmem:[#allocation5 + $0x160] ss:$16 sps:$4 sm:$0xff]  }
  0xa2   : > { %1647 = vmatpush1.bf16.msra.mxu0 %v3396_v23  ;;  %1597 = vmatprep.subr.bf16.mxu1 %v3397_v24  ;;  %v3429_v45 = vld [vmem:[#allocation5 + $0x364] ss:$16 sps:$4 sm:$0xff]   ;;  %v3432_v48 = vld [vmem:[#allocation5 + $0x360] ss:$16 sps:$4 sm:$0xff]   ;;  %v3472_v23 = vld [vmem:[#allocation5 + $0x48] ss:$16 sps:$4 sm:$0xff]  }
  0xa3   : > { %1648 = vmatprep.subr.bf16.mxu0 %v3399_v25  ;;  %v346_v46 = vld [vmem:[%s4219_s12 + $0x8] sm:$0xff]  ;;  %v353_v49 = vld [vmem:[%s4219_s12 + $0x40] sm:$0xff]  ;;  %v348_v51 = vld [vmem:[%s4219_s12 + $0x18] sm:$0xff] }
  0xa4   : > { %v4235_v50 = vpack.c.bf16 %v353_v49, %v346_v46  ;;  %v355_v52 = vld [vmem:[%s4219_s12 + $0x50] sm:$0xff]  ;;  %v345_v6 = vld [vmem:[%s4219_s12] sm:$0xff]  ;;  %v352_v7 = vld [vmem:[%s4219_s12 + $0x38] sm:$0xff] }
  0xa5   : > { %1598 = vmatpush1.bf16.msra.mxu1 %v3401_v26  ;;  %v3433_v53 = vld [vmem:[#allocation5 + $0x184] ss:$16 sps:$4 sm:$0xff]   ;;  %v4239_v55 = vpack.c.bf16 %v355_v52, %v348_v51  ;;  %v3437_v56 = vld [vmem:[#allocation5 + $0x180] ss:$16 sps:$4 sm:$0xff]   ;;  %v4247_v12 = vpack.c.bf16 %v352_v7, %v345_v6  ;;  %v3480_v25 = vld [vmem:[#allocation5 + $0x6c] ss:$16 sps:$4 sm:$0xff]  }
  0xa6   : > { %1649 = vmatpush1.bf16.msra.mxu0 %v3402_v27  ;;  %1599 = vmatprep.subr.bf16.mxu1 %v3403_v28  ;;  %v3435_v54 = vld [vmem:[#allocation5 + $0x384] ss:$16 sps:$4 sm:$0xff]   ;;  %v3438_v57 = vld [vmem:[#allocation5 + $0x380] ss:$16 sps:$4 sm:$0xff]   ;;  %v3478_v27 = vld [vmem:[#allocation5 + $0x68] ss:$16 sps:$4 sm:$0xff]  }
  0xa7   : > { %1650 = vmatprep.subr.bf16.mxu0 %v3405_v29  ;;  %1617 = vmatprep.mubr.bf16.mxu1 %v4235_v50  ;;  %v3439_v58 = vld [vmem:[#allocation5 + $0x1a4] ss:$16 sps:$4 sm:$0xff]   ;;  %v3443_v60 = vld [vmem:[#allocation5 + $0x1a0] ss:$16 sps:$4 sm:$0xff]   ;;  %v3486_v29 = vld [vmem:[#allocation5 + $0x8c] ss:$16 sps:$4 sm:$0xff]  }
  0xa8   : > { %1668 = vmatprep.mubr.bf16.mxu0 %v4239_v55  ;;  %v3441_v59 = vld [vmem:[#allocation5 + $0x3a4] ss:$16 sps:$4 sm:$0xff]   ;;  %v3444_v61 = vld [vmem:[#allocation5 + $0x3a0] ss:$16 sps:$4 sm:$0xff]   ;;  %v3504_v49 = vld [vmem:[#allocation5 + $0xec] ss:$16 sps:$4 sm:$0xff]  }
  0xa9   : > { %1600 = vmatpush1.bf16.msra.mxu1 %v3407_v30  ;;  %v3445_v62 = vld [vmem:[#allocation5 + $0x1c4] ss:$16 sps:$4 sm:$0xff]   ;;  %v3449_v0 = vld [vmem:[#allocation5 + $0x1c0] ss:$16 sps:$4 sm:$0xff]   ;;  %v3526_v7 = vld [vmem:[#allocation5 + $0x168] ss:$16 sps:$4 sm:$0xff]  }
  0xaa   : > { %1651 = vmatpush1.bf16.msra.mxu0 %v3408_v31  ;;  %1601 = vmatprep.subr.bf16.mxu1 %v3409_v32  ;;  %v3447_v63 = vld [vmem:[#allocation5 + $0x3c4] ss:$16 sps:$4 sm:$0xff]   ;;  %v3450_v1 = vld [vmem:[#allocation5 + $0x3c0] ss:$16 sps:$4 sm:$0xff]   ;;  %v3484_v31 = vld [vmem:[#allocation5 + $0x88] ss:$16 sps:$4 sm:$0xff]  }
  0xab   : > { %1652 = vmatprep.subr.bf16.mxu0 %v3411_v33  ;;  %v3451_v2 = vld [vmem:[#allocation5 + $0x1e4] ss:$16 sps:$4 sm:$0xff]   ;;  %v3455_v4 = vld [vmem:[#allocation5 + $0x1e0] ss:$16 sps:$4 sm:$0xff]   ;;  %v3492_v33 = vld [vmem:[#allocation5 + $0xac] ss:$16 sps:$4 sm:$0xff]  }
  0xac   : > { %v3453_v3 = vld [vmem:[#allocation5 + $0x3e4] ss:$16 sps:$4 sm:$0xff]   ;;  %v3456_v5 = vld [vmem:[#allocation5 + $0x3e0] ss:$16 sps:$4 sm:$0xff]  }
  0xad   : > { %1602 = vmatpush1.bf16.msra.mxu1 %v3413_v34  ;;  %v3459_v8 = vld [vmem:[#allocation5 + $0x404] ss:$16 sps:$4 sm:$0xff]   ;;  %v3457_v13 = vld [vmem:[#allocation5 + $0x400] ss:$16 sps:$4 sm:$0xff]  }
  0xae   : > { %1653 = vmatpush1.bf16.msra.mxu0 %v3414_v35  ;;  %1603 = vmatprep.subr.bf16.mxu1 %v3415_v36  ;;  %v347_v9 = vld [vmem:[%s4219_s12 + $0x10] sm:$0xff]  ;;  %v354_v10 = vld [vmem:[%s4219_s12 + $0x48] sm:$0xff]  ;;  %v360_v36 = vld [vmem:[%s4219_s12 + $0x78] sm:$0xff] }
  0xaf   : > { %1654 = vmatprep.subr.bf16.mxu0 %v3417_v37  ;;  %v4249_v15 = vpack.c.bf16 %v354_v10, %v347_v9  ;;  %v3465_v16 = vld [vmem:[#allocation5 + $0x424] ss:$16 sps:$4 sm:$0xff]   ;;  %v3463_v18 = vld [vmem:[#allocation5 + $0x420] ss:$16 sps:$4 sm:$0xff]   ;;  %v3490_v35 = vld [vmem:[#allocation5 + $0xa8] ss:$16 sps:$4 sm:$0xff]   ;;  %v4254_v37 = vpack.c.bf16 %v360_v36, %v360_v36 }
  0xb0   : > { %v3471_v20 = vld [vmem:[#allocation5 + $0x444] ss:$16 sps:$4 sm:$0xff]   ;;  %v3469_v22 = vld [vmem:[#allocation5 + $0x440] ss:$16 sps:$4 sm:$0xff]   ;;  %v3534_v9 = vld [vmem:[#allocation5 + $0x18c] ss:$16 sps:$4 sm:$0xff]  }
  0xb1   : > { %1604 = vmatpush1.bf16.msra.mxu1 %v3419_v38  ;;  %v3477_v24 = vld [vmem:[#allocation5 + $0x464] ss:$16 sps:$4 sm:$0xff]   ;;  %v3475_v26 = vld [vmem:[#allocation5 + $0x460] ss:$16 sps:$4 sm:$0xff]   ;;  %v3556_v36 = vld [vmem:[#allocation5 + $0x228] ss:$16 sps:$4 sm:$0xff]  }
  0xb2   : > { %1655 = vmatpush1.bf16.msra.mxu0 %v3420_v39  ;;  %1605 = vmatprep.subr.bf16.mxu1 %v3421_v40  ;;  %v3483_v28 = vld [vmem:[#allocation5 + $0x484] ss:$16 sps:$4 sm:$0xff]   ;;  %v3481_v30 = vld [vmem:[#allocation5 + $0x480] ss:$16 sps:$4 sm:$0xff]  }
  0xb3   : > { %1656 = vmatprep.subr.bf16.mxu0 %v3423_v41  ;;  %v3489_v32 = vld [vmem:[#allocation5 + $0x4a4] ss:$16 sps:$4 sm:$0xff]   ;;  %v3487_v34 = vld [vmem:[#allocation5 + $0x4a0] ss:$16 sps:$4 sm:$0xff]  }
  0xb4   : > { %v359_v38 = vld [vmem:[%s4219_s12 + $0x70] sm:$0xff]  ;;  %v362_v39 = vld [vmem:[%s4219_s12 + $0x88] sm:$0xff]  ;;  %v361_v40 = vld [vmem:[%s4219_s12 + $0x80] sm:$0xff] }
  0xb5   : > { %1606 = vmatpush1.bf16.msra.mxu1 %v3425_v42  ;;  %v3495_v41 = vld [vmem:[#allocation5 + $0x4c4] ss:$16 sps:$4 sm:$0xff]   ;;  %v4259_v42 = vpack.c.bf16 %v359_v38, %v359_v38  ;;  %v3493_v46 = vld [vmem:[#allocation5 + $0x4c0] ss:$16 sps:$4 sm:$0xff]  }
  0xb6   : > { %1657 = vmatpush1.bf16.msra.mxu0 %v3426_v43  ;;  %1607 = vmatprep.subr.bf16.mxu1 %v3427_v44  ;;  %v4261_v43 = vpack.c.bf16 %v362_v39, %v362_v39  ;;  %v4263_v44 = vpack.c.bf16 %v361_v40, %v361_v40  ;;  %v350_v51 = vld [vmem:[%s4219_s12 + $0x28] sm:$0xff]  ;;  %v357_v52 = vld [vmem:[%s4219_s12 + $0x60] sm:$0xff]  ;;  %v363_v38 = vld [vmem:[%s4219_s12 + $0x90] sm:$0xff] }
  0xb7   : > { %1658 = vmatprep.subr.bf16.mxu0 %v3429_v45  ;;  %v3498_v45 = vld [vmem:[#allocation5 + $0xcc] ss:$16 sps:$4 sm:$0xff]   ;;  %v3523_v6 = vld [vmem:[#allocation5 + $0x560] ss:$16 sps:$4 sm:$0xff]  }
  0xb8   : > { %v3529_v10 = vld [vmem:[#allocation5 + $0x580] ss:$16 sps:$4 sm:$0xff]   ;;  %v3561_v39 = vld [vmem:[#allocation5 + $0x24c] ss:$16 sps:$4 sm:$0xff]  }
  0xb9   : > { %1608 = vmatpush1.bf16.msra.mxu1 %v3431_v47  ;;  %v3496_v47 = vld [vmem:[#allocation5 + $0xc8] ss:$16 sps:$4 sm:$0xff]   ;;  %v3645_v40 = vld [vmem:[#allocation5 + $0x60c] ss:$16 sps:$4 sm:$0xff]  }
  0xba   : > { %1659 = vmatpush1.bf16.msra.mxu0 %v3432_v48  ;;  %1609 = vmatprep.subr.bf16.mxu1 %v3433_v53  ;;  %v3501_v48 = vld [vmem:[#allocation5 + $0x4e4] ss:$16 sps:$4 sm:$0xff]   ;;  %v4271_v53 = vpack.c.bf16 %v357_v52, %v350_v51  ;;  %v3981_v51 = vmov 0  }
  0xbb   : > { %1660 = vmatprep.subr.bf16.mxu0 %v3435_v54  ;;  %v3499_v54 = vld [vmem:[#allocation5 + $0x4e0] ss:$16 sps:$4 sm:$0xff]  }
  0xbd   : > { %1610 = vmatpush1.bf16.msra.mxu1 %v3437_v56  ;;  %v3502_v56 = vld [vmem:[#allocation5 + $0xe8] ss:$16 sps:$4 sm:$0xff]  }
  0xbe   : > { %1661 = vmatpush1.bf16.msra.mxu0 %v3438_v57  ;;  %1611 = vmatprep.subr.bf16.mxu1 %v3439_v58  ;;  %v3507_v57 = vld [vmem:[#allocation5 + $0x504] ss:$16 sps:$4 sm:$0xff]   ;;  %v3510_v58 = vld [vmem:[#allocation5 + $0x10c] ss:$16 sps:$4 sm:$0xff]  }
  0xbf   : > { %1662 = vmatprep.subr.bf16.mxu0 %v3441_v59  ;;  %v3505_v59 = vld [vmem:[#allocation5 + $0x500] ss:$16 sps:$4 sm:$0xff]  }
  0xc1   : > { %1612 = vmatpush1.bf16.msra.mxu1 %v3443_v60  ;;  %v3508_v60 = vld [vmem:[#allocation5 + $0x108] ss:$16 sps:$4 sm:$0xff]  }
  0xc2   : > { %1663 = vmatpush1.bf16.msra.mxu0 %v3444_v61  ;;  %1613 = vmatprep.subr.bf16.mxu1 %v3445_v62  ;;  %v3513_v61 = vld [vmem:[#allocation5 + $0x524] ss:$16 sps:$4 sm:$0xff]   ;;  %v3516_v62 = vld [vmem:[#allocation5 + $0x12c] ss:$16 sps:$4 sm:$0xff]  }
  0xc3   : > { %1664 = vmatprep.subr.bf16.mxu0 %v3447_v63  ;;  %v3511_v63 = vld [vmem:[#allocation5 + $0x520] ss:$16 sps:$4 sm:$0xff]  }
  0xc5   : > { %1614 = vmatpush1.bf16.msra.mxu1 %v3449_v0  ;;  %v3519_v0 = vld [vmem:[#allocation5 + $0x544] ss:$16 sps:$4 sm:$0xff]  }
  0xc6   : > { %1665 = vmatpush1.bf16.msra.mxu0 %v3450_v1  ;;  %1615 = vmatprep.subr.bf16.mxu1 %v3451_v2  ;;  %v3522_v1 = vld [vmem:[#allocation5 + $0x14c] ss:$16 sps:$4 sm:$0xff]   ;;  %v3517_v2 = vld [vmem:[#allocation5 + $0x540] ss:$16 sps:$4 sm:$0xff]  }
  0xc7   : > { %1666 = vmatprep.subr.bf16.mxu0 %v3453_v3  ;;  %v3520_v3 = vld [vmem:[#allocation5 + $0x148] ss:$16 sps:$4 sm:$0xff]  }
  0xc9   : > { %1616 = vmatpush1.bf16.msra.mxu1 %v3455_v4  ;;  %v3525_v4 = vld [vmem:[#allocation5 + $0x564] ss:$16 sps:$4 sm:$0xff]  }
  0xca   : > { %1667 = vmatpush1.bf16.msra.mxu0 %v3456_v5  ;;  %1789 = vmatprep.subr.bf16.mxu1 %v3462_v11  ;;  %v3528_v5 = vld [vmem:[#allocation5 + $0x16c] ss:$16 sps:$4 sm:$0xff]   ;;  %v3532_v11 = vld [vmem:[#allocation5 + $0x188] ss:$16 sps:$4 sm:$0xff]  }
  0xcb   : > { %1687 = vmatprep.subr.bf16.mxu0 %v3459_v8  ;;  %v3531_v8 = vld [vmem:[#allocation5 + $0x584] ss:$16 sps:$4 sm:$0xff]  }
  0xcc   : > { %1618 = vmatmul.mubr.bf16.vlgmr.msra.gmra.mrb[0].mxu1 %v4247_v12 }
  0xcd   : > { %1669 = vmatmul.mubr.bf16.vlgmr.msra.gmra.mrb[0].mxu0 %v4249_v15  ;;  %1790 = vmatpush1.bf16.msra.mxu1 %v3460_v14  ;;  %v3540_v14 = vld [vmem:[#allocation5 + $0x1ac] ss:$16 sps:$4 sm:$0xff]  }
  0xce   : > { %1688 = vmatpush1.bf16.msra.mxu0 %v3457_v13  ;;  %1791 = vmatprep.subr.bf16.mxu1 %v3468_v17  ;;  %v3537_v13 = vld [vmem:[#allocation5 + $0x5a4] ss:$16 sps:$4 sm:$0xff]   ;;  %v3538_v17 = vld [vmem:[#allocation5 + $0x1a8] ss:$16 sps:$4 sm:$0xff]  }
  0xcf   : > { %1689 = vmatprep.subr.bf16.mxu0 %v3465_v16  ;;  %1627 = vmatprep.mubr.bf16.mxu1 %v4254_v37  ;;  %v3535_v16 = vld [vmem:[#allocation5 + $0x5a0] ss:$16 sps:$4 sm:$0xff]  }
  0xd0   : > { %1678 = vmatprep.mubr.bf16.mxu0 %v4261_v43 }
  0xd1   : > { %1792 = vmatpush1.bf16.msra.mxu1 %v3466_v19  ;;  %v3546_v19 = vld [vmem:[#allocation5 + $0x1cc] ss:$16 sps:$4 sm:$0xff]  }
  0xd2   : > { %1690 = vmatpush1.bf16.msra.mxu0 %v3463_v18  ;;  %1793 = vmatprep.subr.bf16.mxu1 %v3474_v21  ;;  %v3543_v18 = vld [vmem:[#allocation5 + $0x5c4] ss:$16 sps:$4 sm:$0xff]   ;;  %v3544_v21 = vld [vmem:[#allocation5 + $0x1c8] ss:$16 sps:$4 sm:$0xff]  }
  0xd3   : > { %1691 = vmatprep.subr.bf16.mxu0 %v3471_v20  ;;  %v3541_v20 = vld [vmem:[#allocation5 + $0x5c0] ss:$16 sps:$4 sm:$0xff]  }
  0xd4   : > { %1628 = vmatmul.mubr.bf16.gmra.mrb[4].mxu1 %v4259_v42 }
  0xd5   : > { %1794 = vmatpush1.bf16.msra.mxu1 %v3472_v23  ;;  %1679 = vmatmul.mubr.bf16.gmra.mrb[4].mxu0 %v4263_v44  ;;  %v3552_v23 = vld [vmem:[#allocation5 + $0x1ec] ss:$16 sps:$4 sm:$0xff]  }
  0xd6   : > { %1692 = vmatpush1.bf16.msra.mxu0 %v3469_v22  ;;  %1795 = vmatprep.subr.bf16.mxu1 %v3480_v25  ;;  %v3549_v22 = vld [vmem:[#allocation5 + $0x5e4] ss:$16 sps:$4 sm:$0xff]   ;;  %v3550_v25 = vld [vmem:[#allocation5 + $0x1e8] ss:$16 sps:$4 sm:$0xff]  }
  0xd7   : > { %1693 = vmatprep.subr.bf16.mxu0 %v3477_v24  ;;  %1821 = vmatprep.mubr.bf16.mxu1 %v4235_v50  ;;  %v3514_v50 = vld [vmem:[#allocation5 + $0x128] ss:$16 sps:$4 sm:$0xff]   ;;  %v3547_v24 = vld [vmem:[#allocation5 + $0x5e0] ss:$16 sps:$4 sm:$0xff]  }
  0xd8   : > { %1719 = vmatprep.mubr.bf16.mxu0 %v4271_v53 }
  0xd9   : > { %1796 = vmatpush1.bf16.msra.mxu1 %v3478_v27  ;;  %v356_v27 = vld [vmem:[%s4219_s12 + $0x58] sm:$0xff] }
  0xda   : > { %1694 = vmatpush1.bf16.msra.mxu0 %v3475_v26  ;;  %1797 = vmatprep.subr.bf16.mxu1 %v3486_v29  ;;  %v349_v26 = vld [vmem:[%s4219_s12 + $0x20] sm:$0xff]  ;;  %v364_v29 = vld [vmem:[%s4219_s12 + $0x98] sm:$0xff] }
  0xdb   : > { %1695 = vmatprep.subr.bf16.mxu0 %v3483_v28  ;;  %v3555_v28 = vld [vmem:[#allocation5 + $0x20c] ss:$16 sps:$4 sm:$0xff]  }
  0xdd   : > { %1798 = vmatpush1.bf16.msra.mxu1 %v3484_v31  ;;  %v4278_v31 = vpack.c.bf16 %v356_v27, %v349_v26  ;;  %v3603_v26 = vld [vmem:[#allocation5 + $0x3ec] ss:$16 sps:$4 sm:$0xff]   ;;  %v3673_v27 = vld [vmem:[#allocation7 + $0x60] ss:$8 sps:$4 sm:$0xff]  }
  0xde   : > { %1696 = vmatpush1.bf16.msra.mxu0 %v3481_v30  ;;  %1799 = vmatprep.subr.bf16.mxu1 %v3492_v33  ;;  %v3564_v30 = vld [vmem:[#allocation5 + $0x604] ss:$16 sps:$4 sm:$0xff]   ;;  %v4280_v33 = vpack.c.bf16 %v364_v29, %v364_v29  ;;  %v3601_v29 = vld [vmem:[#allocation5 + $0x3e8] ss:$16 sps:$4 sm:$0xff]  }
  0xdf   : > { %1697 = vmatprep.subr.bf16.mxu0 %v3489_v32  ;;  %v3553_v32 = vld [vmem:[#allocation5 + $0x208] ss:$16 sps:$4 sm:$0xff]  }
  0xe1   : > { %1800 = vmatpush1.bf16.msra.mxu1 %v3490_v35  ;;  %v3562_v35 = vld [vmem:[#allocation5 + $0x600] ss:$16 sps:$4 sm:$0xff]  }
  0xe2   : > { %1698 = vmatpush1.bf16.msra.mxu0 %v3487_v34  ;;  %1801 = vmatprep.subr.bf16.mxu1 %v3498_v45  ;;  %v3558_v34 = vld [vmem:[#allocation5 + $0x22c] ss:$16 sps:$4 sm:$0xff]   ;;  %v3559_v45 = vld [vmem:[#allocation5 + $0x248] ss:$16 sps:$4 sm:$0xff]  }
  0xe3   : > { %1699 = vmatprep.subr.bf16.mxu0 %v3495_v41  ;;  %v4287_v41 = vpack.c.bf16 %v363_v38, %v363_v38  ;;  %v3679_v38 = vld [vmem:[#allocation7 + $0x80] ss:$8 sps:$4 sm:$0xff]  }
  0xe5   : > { %1802 = vmatpush1.bf16.msra.mxu1 %v3496_v47  ;;  %v351_v47 = vld [vmem:[%s4219_s12 + $0x30] sm:$0xff] }
  0xe6   : > { %1700 = vmatpush1.bf16.msra.mxu0 %v3493_v46  ;;  %1803 = vmatprep.subr.bf16.mxu1 %v3504_v49  ;;  %v3565_v46 = vld [vmem:[#allocation5 + $0x268] ss:$16 sps:$4 sm:$0xff]   ;;  %v3570_v49 = vld [vmem:[#allocation5 + $0x28c] ss:$16 sps:$4 sm:$0xff]  }
  0xe7   : > { %1701 = vmatprep.subr.bf16.mxu0 %v3501_v48  ;;  %v358_v48 = vld [vmem:[%s4219_s12 + $0x68] sm:$0xff] }
  0xe8   : > { %v372_v52 = vpack.c.bf16 %v358_v48, %v351_v47  ;;  %v3610_v47 = vld [vmem:[#allocation5 + $0x448] ss:$16 sps:$4 sm:$0xff]   ;;  %v3615_v48 = vld [vmem:[#allocation5 + $0x46c] ss:$16 sps:$4 sm:$0xff]  }
  0xe9   : > { %1804 = vmatpush1.bf16.msra.mxu1 %v3502_v56  ;;  %v3643_v56 = vld [vmem:[#allocation5 + $0x608] ss:$16 sps:$4 sm:$0xff]  }
  0xea   : > { %1702 = vmatpush1.bf16.msra.mxu0 %v3499_v54  ;;  %1805 = vmatprep.subr.bf16.mxu1 %v3510_v58  ;;  %v3573_v54 = vld [vmem:[#allocation5 + $0x2ac] ss:$16 sps:$4 sm:$0xff]  }
  0xeb   : > { %1703 = vmatprep.subr.bf16.mxu0 %v3507_v57  ;;  %v3571_v57 = vld [vmem:[#allocation5 + $0x2a8] ss:$16 sps:$4 sm:$0xff]  }
  0xec   : > { %v365_v58 = vld [vmem:[%s4219_s12 + $0xa0] sm:$0xff]  ;;  %s2748_s12 = scalar_lea.sflag [#allocation4], %s4215_s17 }
  0xed   : > { %1806 = vmatpush1.bf16.msra.mxu1 %v3508_v60  ;;  %v379_v60 = vpack.c.bf16 %v365_v58, %v365_v58  ;;  %v3696_v58 = vld [vmem:[#allocation7 + $0xd4] ss:$8 sps:$4 sm:$0xff]  }
  0xee   : > { %1704 = vmatpush1.bf16.msra.mxu0 %v3505_v59  ;;  %1807 = vmatprep.subr.bf16.mxu1 %v3516_v62  ;;  %v3576_v59 = vld [vmem:[#allocation5 + $0x2cc] ss:$16 sps:$4 sm:$0xff]   ;;  %v3577_v62 = vld [vmem:[#allocation5 + $0x2e8] ss:$16 sps:$4 sm:$0xff]  }
  0xef   : > { %1705 = vmatprep.subr.bf16.mxu0 %v3513_v61  ;;  %v3579_v61 = vld [vmem:[#allocation5 + $0x2ec] ss:$16 sps:$4 sm:$0xff]  }
  0xf1   : > { %1808 = vmatpush1.bf16.msra.mxu1 %v3514_v50  ;;  %v3580_v50 = vld [vmem:[#allocation5 + $0x308] ss:$16 sps:$4 sm:$0xff]  }
  0xf2   : > { %1706 = vmatpush1.bf16.msra.mxu0 %v3511_v63  ;;  %1809 = vmatprep.subr.bf16.mxu1 %v3522_v1  ;;  %v3582_v63 = vld [vmem:[#allocation5 + $0x30c] ss:$16 sps:$4 sm:$0xff]   ;;  %v3655_v1 = vld [vmem:[#allocation7] ss:$8 sps:$4 sm:$0xff]  }
  0xf3   : > { %1707 = vmatprep.subr.bf16.mxu0 %v3519_v0  ;;  %v3585_v0 = vld [vmem:[#allocation5 + $0x32c] ss:$16 sps:$4 sm:$0xff]  }
  0xf5   : > { %1810 = vmatpush1.bf16.msra.mxu1 %v3520_v3  ;;  %v3583_v3 = vld [vmem:[#allocation5 + $0x328] ss:$16 sps:$4 sm:$0xff]  }
  0xf6   : > { %1708 = vmatpush1.bf16.msra.mxu0 %v3517_v2  ;;  %1811 = vmatprep.subr.bf16.mxu1 %v3528_v5  ;;  %v3660_v2 = vld [vmem:[#allocation7 + $0x14] ss:$8 sps:$4 sm:$0xff]   ;;  %v3658_v5 = vld [vmem:[#allocation7 + $0x10] ss:$8 sps:$4 sm:$0xff]  }
  0xf7   : > { %1709 = vmatprep.subr.bf16.mxu0 %v3525_v4  ;;  %v3588_v4 = vld [vmem:[#allocation5 + $0x34c] ss:$16 sps:$4 sm:$0xff]  }
  0xf9   : > { %1812 = vmatpush1.bf16.msra.mxu1 %v3526_v7  ;;  %v3586_v7 = vld [vmem:[#allocation5 + $0x348] ss:$16 sps:$4 sm:$0xff]  }
  0xfa   : > { %1710 = vmatpush1.bf16.msra.mxu0 %v3523_v6  ;;  %1813 = vmatprep.subr.bf16.mxu1 %v3534_v9  ;;  %v3663_v6 = vld [vmem:[#allocation7 + $0x24] ss:$8 sps:$4 sm:$0xff]   ;;  %v3661_v9 = vld [vmem:[#allocation7 + $0x20] ss:$8 sps:$4 sm:$0xff]  }
  0xfb   : > { %1711 = vmatprep.subr.bf16.mxu0 %v3531_v8  ;;  %v3591_v8 = vld [vmem:[#allocation5 + $0x36c] ss:$16 sps:$4 sm:$0xff]  }
  0xfd   : > { %1814 = vmatpush1.bf16.msra.mxu1 %v3532_v11  ;;  %v3589_v11 = vld [vmem:[#allocation5 + $0x368] ss:$16 sps:$4 sm:$0xff]  }
  0xfe   : > { %1712 = vmatpush1.bf16.msra.mxu0 %v3529_v10  ;;  %1815 = vmatprep.subr.bf16.mxu1 %v3540_v14  ;;  %v3666_v10 = vld [vmem:[#allocation7 + $0x34] ss:$8 sps:$4 sm:$0xff]   ;;  %v3664_v14 = vld [vmem:[#allocation7 + $0x30] ss:$8 sps:$4 sm:$0xff]  }
  0xff   : > { %1713 = vmatprep.subr.bf16.mxu0 %v3537_v13  ;;  %v3594_v13 = vld [vmem:[#allocation5 + $0x38c] ss:$16 sps:$4 sm:$0xff]  }
 0x101   : > { %1816 = vmatpush1.bf16.msra.mxu1 %v3538_v17  ;;  %v3592_v17 = vld [vmem:[#allocation5 + $0x388] ss:$16 sps:$4 sm:$0xff]  }
 0x102   : > { %1714 = vmatpush1.bf16.msra.mxu0 %v3535_v16  ;;  %1817 = vmatprep.subr.bf16.mxu1 %v3546_v19  ;;  %v3669_v16 = vld [vmem:[#allocation7 + $0x44] ss:$8 sps:$4 sm:$0xff]   ;;  %v3667_v19 = vld [vmem:[#allocation7 + $0x40] ss:$8 sps:$4 sm:$0xff]  }
 0x103   : > { %1715 = vmatprep.subr.bf16.mxu0 %v3543_v18  ;;  %v3597_v18 = vld [vmem:[#allocation5 + $0x3ac] ss:$16 sps:$4 sm:$0xff]  }
 0x105   : > { %1818 = vmatpush1.bf16.msra.mxu1 %v3544_v21  ;;  %v3595_v21 = vld [vmem:[#allocation5 + $0x3a8] ss:$16 sps:$4 sm:$0xff]  }
 0x106   : > { %1716 = vmatpush1.bf16.msra.mxu0 %v3541_v20  ;;  %1819 = vmatprep.subr.bf16.mxu1 %v3552_v23  ;;  %v3672_v20 = vld [vmem:[#allocation7 + $0x54] ss:$8 sps:$4 sm:$0xff]   ;;  %v3670_v23 = vld [vmem:[#allocation7 + $0x50] ss:$8 sps:$4 sm:$0xff]  }
 0x107   : > { %1717 = vmatprep.subr.bf16.mxu0 %v3549_v22  ;;  %v3600_v22 = vld [vmem:[#allocation5 + $0x3cc] ss:$16 sps:$4 sm:$0xff]  }
 0x109   : > { %1820 = vmatpush1.bf16.msra.mxu1 %v3550_v25  ;;  %v3598_v25 = vld [vmem:[#allocation5 + $0x3c8] ss:$16 sps:$4 sm:$0xff]  }
 0x10a   : > { %1718 = vmatpush1.bf16.msra.mxu0 %v3547_v24  ;;  %1840 = vmatprep.subr.bf16.mxu1 %v3555_v28  ;;  %v3675_v24 = vld [vmem:[#allocation7 + $0x64] ss:$8 sps:$4 sm:$0xff]   ;;  %v3678_v28 = vld [vmem:[#allocation7 + $0x74] ss:$8 sps:$4 sm:$0xff]  }
 0x10b   : > { %1738 = vmatprep.subr.bf16.mxu0 %v3564_v30  ;;  %v3606_v30 = vld [vmem:[#allocation5 + $0x40c] ss:$16 sps:$4 sm:$0xff]  }
 0x10c   : > { %1822 = vmatmul.mubr.bf16.vlgmr.msra.gmra.mrb[8].mxu1 %v4247_v12  ;;  %v3567_v12 = vld [vmem:[#allocation5 + $0x26c] ss:$16 sps:$4 sm:$0xff]  }
 0x10d   : > { %1720 = vmatmul.mubr.bf16.vlgmr.msra.gmra.mrb[0].mxu0 %v4278_v31  ;;  %1841 = vmatpush1.bf16.msra.mxu1 %v3553_v32  ;;  %v3676_v32 = vld [vmem:[#allocation7 + $0x70] ss:$8 sps:$4 sm:$0xff]  }
 0x10e   : > { %1729 = vmatprep.mubr.bf16.mxu0 %v4280_v33  ;;  %1842 = vmatprep.subr.bf16.mxu1 %v3558_v34  ;;  %v3681_v34 = vld [vmem:[#allocation7 + $0x84] ss:$8 sps:$4 sm:$0xff]  }
 0x10f   : > { %1739 = vmatpush1.bf16.msra.mxu0 %v3562_v35  ;;  %1831 = vmatprep.mubr.bf16.mxu1 %v4254_v37  ;;  %v3568_v37 = vld [vmem:[#allocation5 + $0x288] ss:$16 sps:$4 sm:$0xff]  }
 0x110   : > { %1942 = vmatprep.subr.bf16.mxu0 %v3645_v40  ;;  %v3604_v35 = vld [vmem:[#allocation5 + $0x408] ss:$16 sps:$4 sm:$0xff]  }
 0x111   : > { %1843 = vmatpush1.bf16.msra.mxu1 %v3556_v36  ;;  %v3609_v36 = vld [vmem:[#allocation5 + $0x42c] ss:$16 sps:$4 sm:$0xff]   ;;  %v3607_v40 = vld [vmem:[#allocation5 + $0x428] ss:$16 sps:$4 sm:$0xff]  }
 0x112   : > { %1844 = vmatprep.subr.bf16.mxu1 %v3561_v39  ;;  %v3684_v39 = vld [vmem:[#allocation7 + $0x94] ss:$8 sps:$4 sm:$0xff]  }
 0x114   : > { %1832 = vmatmul.mubr.bf16.gmra.mrb[12].mxu1 %v4259_v42  ;;  %v3574_v42 = vld [vmem:[#allocation5 + $0x2c8] ss:$16 sps:$4 sm:$0xff]  }
 0x115   : > { %1730 = vmatmul.mubr.bf16.gmra.mrb[4].mxu0 %v4287_v41  ;;  %1845 = vmatpush1.bf16.msra.mxu1 %v3559_v45  ;;  %v3612_v45 = vld [vmem:[#allocation5 + $0x44c] ss:$16 sps:$4 sm:$0xff]  }
 0x116   : > { %1770 = vmatprep.mubr.bf16.mxu0 %v3981_v51  ;;  %1846 = vmatprep.subr.bf16.mxu1 %v3567_v12  ;;  %v3682_v12 = vld [vmem:[#allocation7 + $0x90] ss:$8 sps:$4 sm:$0xff]  }
 0x117   : > { %1872 = vmatprep.mubr.bf16.mxu1 %v4239_v55  ;;  %v3657_v55 = vld [vmem:[#allocation7 + $0x4] ss:$8 sps:$4 sm:$0xff]  }
 0x119   : > { %1847 = vmatpush1.bf16.msra.mxu1 %v3565_v46  ;;  %v3687_v46 = vld [vmem:[#allocation7 + $0xa4] ss:$8 sps:$4 sm:$0xff]  }
 0x11a   : > { %1848 = vmatprep.subr.bf16.mxu1 %v3570_v49  ;;  %v3685_v49 = vld [vmem:[#allocation7 + $0xa0] ss:$8 sps:$4 sm:$0xff]  }
 0x11d   : > { %3070 = vmatmul.mubr.msk.bf16.vlgmr.msra.gmra.mrb[0].mxu0 %vm1578_vm0, %v372_v52  ;;  %1849 = vmatpush1.bf16.msra.mxu1 %v3568_v37  ;;  %v3688_v37 = vld [vmem:[#allocation7 + $0xb0] ss:$8 sps:$4 sm:$0xff]  }
 0x11e   : > { %1780 = vmatprep.mubr.bf16.mxu0 %v3981_v51  ;;  %1850 = vmatprep.subr.bf16.mxu1 %v3573_v54  ;;  %v3616_v54 = vld [vmem:[#allocation5 + $0x488] ss:$16 sps:$4 sm:$0xff]  }
 0x11f   : > { %1943 = vmatpush1.bf16.msra.mxu0 %v3643_v56  ;;  %v3621_v56 = vld [vmem:[#allocation5 + $0x4ac] ss:$16 sps:$4 sm:$0xff]  }
 0x120   : > { %2409 = vmatprep.subr.bf16.mxu0 %v3657_v55  ;;  %v3630_v55 = vld [vmem:[#allocation5 + $0x50c] ss:$16 sps:$4 sm:$0xff]  }
 0x121   : > { %1851 = vmatpush1.bf16.msra.mxu1 %v3571_v57  ;;  %v3691_v57 = vld [vmem:[#allocation7 + $0xc0] ss:$8 sps:$4 sm:$0xff]  }
 0x122   : > { %1852 = vmatprep.subr.bf16.mxu1 %v3576_v59  ;;  %v3624_v59 = vld [vmem:[#allocation5 + $0x4cc] ss:$16 sps:$4 sm:$0xff]  }
 0x125   : > { %3071 = vmatmul.mubr.msk.bf16.gmra.mrb[4].mxu0 %vm1578_vm0, %v379_v60  ;;  %1853 = vmatpush1.bf16.msra.mxu1 %v3574_v42  ;;  %v3622_v42 = vld [vmem:[#allocation5 + $0x4c8] ss:$16 sps:$4 sm:$0xff]  }
 0x126   : > { %1974 = vmatprep.mubr.bf16.mxu0 %v3981_v51  ;;  %1854 = vmatprep.subr.bf16.mxu1 %v3579_v61  ;;  %v3625_v61 = vld [vmem:[#allocation5 + $0x4e8] ss:$16 sps:$4 sm:$0xff]  }
 0x129   : > { %1855 = vmatpush1.bf16.msra.mxu1 %v3577_v62  ;;  %v3628_v62 = vld [vmem:[#allocation5 + $0x508] ss:$16 sps:$4 sm:$0xff]  }
 0x12a   : > { %1856 = vmatprep.subr.bf16.mxu1 %v3582_v63  ;;  %v3633_v63 = vld [vmem:[#allocation5 + $0x52c] ss:$16 sps:$4 sm:$0xff]  }
 0x12d   : > { %3072 = vmatmul.mubr.msk.bf16.vlgmr.msra.gmra.mrb[8].mxu0 %vm1578_vm0, %v372_v52  ;;  %1857 = vmatpush1.bf16.msra.mxu1 %v3580_v50  ;;  %v3693_v52 = vld [vmem:[#allocation7 + $0xc4] ss:$8 sps:$4 sm:$0xff]   ;;  %v3631_v50 = vld [vmem:[#allocation5 + $0x528] ss:$16 sps:$4 sm:$0xff]  }
 0x12e   : > { %1984 = vmatprep.mubr.bf16.mxu0 %v3981_v51  ;;  %1858 = vmatprep.subr.bf16.mxu1 %v3585_v0  ;;  %v3690_v51 = vld [vmem:[#allocation7 + $0xb4] ss:$8 sps:$4 sm:$0xff]  }
 0x12f   : > { %2410 = vmatpush1.bf16.msra.mxu0 %v3655_v1  ;;  %v3636_v0 = vld [vmem:[#allocation5 + $0x54c] ss:$16 sps:$4 sm:$0xff]  }
 0x130   : > { %2411 = vmatprep.subr.bf16.mxu0 %v3660_v2  ;;  %v3699_v1 = vld [vmem:[#allocation7 + $0xe4] ss:$8 sps:$4 sm:$0xff]   ;;  %v3634_v2 = vld [vmem:[#allocation5 + $0x548] ss:$16 sps:$4 sm:$0xff]  }
 0x131   : > { %1859 = vmatpush1.bf16.msra.mxu1 %v3583_v3  ;;  %v3697_v3 = vld [vmem:[#allocation7 + $0xe0] ss:$8 sps:$4 sm:$0xff]  }
 0x132   : > { %1860 = vmatprep.subr.bf16.mxu1 %v3588_v4  ;;  %v3639_v4 = vld [vmem:[#allocation5 + $0x56c] ss:$16 sps:$4 sm:$0xff]  }
 0x133   : > { %2412 = vmatpush1.bf16.msra.mxu0 %v3658_v5  ;;  %v3702_v5 = vld [vmem:[#allocation7 + $0xf4] ss:$8 sps:$4 sm:$0xff]  }
 0x134   : > { %2413 = vmatprep.subr.bf16.mxu0 %v3663_v6  ;;  %v3637_v6 = vld [vmem:[#allocation5 + $0x568] ss:$16 sps:$4 sm:$0xff]  }
 0x135   : > { %3073 = vmatmul.mubr.msk.bf16.gmra.mrb[12].mxu0 %vm1578_vm0, %v379_v60  ;;  %1861 = vmatpush1.bf16.msra.mxu1 %v3586_v7  ;;  %v3627_v60 = vld [vmem:[#allocation5 + $0x4ec] ss:$16 sps:$4 sm:$0xff]   ;;  %v3700_v7 = vld [vmem:[#allocation7 + $0xf0] ss:$8 sps:$4 sm:$0xff]  }
 0x136   : > { %1862 = vmatprep.subr.bf16.mxu1 %v3591_v8  ;;  %v3642_v8 = vld [vmem:[#allocation5 + $0x58c] ss:$16 sps:$4 sm:$0xff]  }
 0x137   : > { %2414 = vmatpush1.bf16.msra.mxu0 %v3661_v9  ;;  %v3640_v9 = vld [vmem:[#allocation5 + $0x588] ss:$16 sps:$4 sm:$0xff]  }
 0x138   : > { %2415 = vmatprep.subr.bf16.mxu0 %v3666_v10  ;;  %v3648_v10 = vld [vmem:[#allocation5 + $0x5ac] ss:$16 sps:$4 sm:$0xff]  }
 0x139   : > { %1863 = vmatpush1.bf16.msra.mxu1 %v3589_v11  ;;  %v3646_v11 = vld [vmem:[#allocation5 + $0x5a8] ss:$16 sps:$4 sm:$0xff]  }
 0x13a   : > { %1864 = vmatprep.subr.bf16.mxu1 %v3594_v13  ;;  %v3651_v13 = vld [vmem:[#allocation5 + $0x5cc] ss:$16 sps:$4 sm:$0xff]  }
 0x13b   : > { %2416 = vmatpush1.bf16.msra.mxu0 %v3664_v14  ;;  %v3649_v14 = vld [vmem:[#allocation5 + $0x5c8] ss:$16 sps:$4 sm:$0xff]  }
 0x13c   : > { %2417 = vmatprep.subr.bf16.mxu0 %v3669_v16  ;;  %v3654_v16 = vld [vmem:[#allocation5 + $0x5ec] ss:$16 sps:$4 sm:$0xff]  }
 0x13d   : > { %1865 = vmatpush1.bf16.msra.mxu1 %v3592_v17  ;;  %v3705_v17 = vld [vmem:[#allocation7 + $0x104] ss:$8 sps:$4 sm:$0xff]  }
 0x13e   : > { %1866 = vmatprep.subr.bf16.mxu1 %v3597_v18  ;;  %v3652_v18 = vld [vmem:[#allocation5 + $0x5e8] ss:$16 sps:$4 sm:$0xff]  }
 0x13f   : > { %2418 = vmatpush1.bf16.msra.mxu0 %v3667_v19 }
 0x140   : > { %2419 = vmatprep.subr.bf16.mxu0 %v3672_v20 }
 0x141   : > { %1867 = vmatpush1.bf16.msra.mxu1 %v3595_v21 }
 0x142   : > { %1868 = vmatprep.subr.bf16.mxu1 %v3600_v22 }
 0x143   : > { %2420 = vmatpush1.bf16.msra.mxu0 %v3670_v23 }
 0x144   : > { %2421 = vmatprep.subr.bf16.mxu0 %v3675_v24 }
 0x145   : > { %1869 = vmatpush1.bf16.msra.mxu1 %v3598_v25 }
 0x146   : > { %1870 = vmatprep.subr.bf16.mxu1 %v3603_v26 }
 0x147   : > { %2422 = vmatpush1.bf16.msra.mxu0 %v3673_v27  ;;  %v578_v27 = vlaneseq }
 0x148   : > { %2423 = vmatprep.subr.bf16.mxu0 %v3678_v28 }
 0x149   : > { %1871 = vmatpush1.bf16.msra.mxu1 %v3601_v29  ;;  %v4306_v28 = vshrl.u32 %v578_v27, 7 }
 0x14a   : > { %1891 = vmatprep.subr.bf16.mxu1 %v3606_v30 }
 0x14b   : > { %2424 = vmatpush1.bf16.msra.mxu0 %v3676_v32  ;;  %v580_v29 = vsub.s32 0, %v4306_v28 }
 0x14c   : > { %2425 = vmatprep.subr.bf16.mxu0 %v3681_v34  ;;  %1873 = vmatmul.mubr.bf16.vlgmr.msra.gmra.mrb[8].mxu1 %v4249_v15  ;;  %v3613_v15 = vld [vmem:[#allocation5 + $0x468] ss:$16 sps:$4 sm:$0xff]  }
 0x14d   : > { %1892 = vmatpush1.bf16.msra.mxu1 %v3604_v35  ;;  %1882 = vmatprep.mubr.bf16.mxu1 %v4261_v43  ;;  %v3618_v43 = vld [vmem:[#allocation5 + $0x48c] ss:$16 sps:$4 sm:$0xff]  }
 0x14e   : > { %1893 = vmatprep.subr.bf16.mxu1 %v3609_v36 }
 0x14f   : > { %2426 = vmatpush1.bf16.msra.mxu0 %v3679_v38 }
 0x150   : > { %2427 = vmatprep.subr.bf16.mxu0 %v3684_v39 }
 0x151   : > { %1894 = vmatpush1.bf16.msra.mxu1 %v3607_v40 }
 0x152   : > { %1895 = vmatprep.subr.bf16.mxu1 %v3612_v45 }
 0x153   : > { %2428 = vmatpush1.bf16.msra.mxu0 %v3682_v12 }
 0x154   : > { %2429 = vmatprep.subr.bf16.mxu0 %v3687_v46  ;;  %1883 = vmatmul.mubr.bf16.gmra.mrb[12].mxu1 %v4263_v44  ;;  %v3619_v44 = vld [vmem:[#allocation5 + $0x4a8] ss:$16 sps:$4 sm:$0xff]  }
 0x155   : > { %1896 = vmatpush1.bf16.msra.mxu1 %v3610_v47  ;;  %1923 = vmatprep.mubr.bf16.mxu1 %v4271_v53  ;;  %v3694_v53 = vld [vmem:[#allocation7 + $0xd0] ss:$8 sps:$4 sm:$0xff]  }
 0x156   : > { %1897 = vmatprep.subr.bf16.mxu1 %v3615_v48 }
 0x157   : > { %2430 = vmatpush1.bf16.msra.mxu0 %v3685_v49 }
 0x158   : > { %2431 = vmatprep.subr.bf16.mxu0 %v3690_v51 }
 0x159   : > { %1898 = vmatpush1.bf16.msra.mxu1 %v3613_v15  ;;  %v3751_v15 = vld [vmem:[#allocation8 + $0x40] sm:$0xff]  }
 0x15a   : > { %1899 = vmatprep.subr.bf16.mxu1 %v3618_v43  ;;  %v3752_v43 = vld [vmem:[#allocation8] sm:$0xff]  }
 0x15b   : > { %2432 = vmatpush1.bf16.msra.mxu0 %v3688_v37  ;;  %v3753_v37 = vld [vmem:[#allocation8 + $0x48] sm:$0xff]  }
 0x15c   : > { %2433 = vmatprep.subr.bf16.mxu0 %v3693_v52 }
 0x15d   : > { %1900 = vmatpush1.bf16.msra.mxu1 %v3616_v54 }
 0x15e   : > { %1901 = vmatprep.subr.bf16.mxu1 %v3621_v56 }
 0x15f   : > { %2434 = vmatpush1.bf16.msra.mxu0 %v3691_v57 }
 0x160   : > { %2435 = vmatprep.subr.bf16.mxu0 %v3696_v58 }
 0x161   : > { %1902 = vmatpush1.bf16.msra.mxu1 %v3619_v44 }
 0x162   : > { %1903 = vmatprep.subr.bf16.mxu1 %v3624_v59 }
 0x163   : > { %2436 = vmatpush1.bf16.msra.mxu0 %v3694_v53  ;;  %v3703_v53 = vld [vmem:[#allocation7 + $0x100] ss:$8 sps:$4 sm:$0xff]  }
 0x164   : > { %2437 = vmatprep.subr.bf16.mxu0 %v3699_v1 }
 0x165   : > { %1904 = vmatpush1.bf16.msra.mxu1 %v3622_v42  ;;  %v3754_v42 = vld [vmem:[#allocation8 + $0x8] sm:$0xff]  }
 0x166   : > { %1905 = vmatprep.subr.bf16.mxu1 %v3627_v60 }
 0x167   : > { %2438 = vmatpush1.bf16.msra.mxu0 %v3697_v3 }
 0x168   : > { %2439 = vmatprep.subr.bf16.mxu0 %v3702_v5  ;;  %v3756_v5 = vld [vmem:[#allocation8 + $0x10] sm:$0xff]  }
 0x169   : > { %1906 = vmatpush1.bf16.msra.mxu1 %v3625_v61 }
 0x16a   : > { %1907 = vmatprep.subr.bf16.mxu1 %v3630_v55  ;;  %v3708_v55 = vld [vmem:[#allocation7 + $0x114] ss:$8 sps:$4 sm:$0xff]  }
 0x16b   : > { %2440 = vmatpush1.bf16.msra.mxu0 %v3700_v7  ;;  %v3757_v7 = vld [vmem:[#allocation8 + $0x58] sm:$0xff]  }
 0x16c   : > { %2460 = vmatprep.subr.bf16.mxu0 %v3705_v17  ;;  %v3759_v17 = vld [vmem:[#allocation8 + $0x60] sm:$0xff]  }
 0x16d   : > { %1908 = vmatpush1.bf16.msra.mxu1 %v3628_v62  ;;  %v3755_v62 = vld [vmem:[#allocation8 + $0x50] sm:$0xff]  }
 0x16e   : > { %1909 = vmatprep.subr.bf16.mxu1 %v3633_v63 }
 0x171   : > { %1910 = vmatpush1.bf16.msra.mxu1 %v3631_v50 }
 0x172   : > { %1911 = vmatprep.subr.bf16.mxu1 %v3636_v0 }
 0x175   : > { %1912 = vmatpush1.bf16.msra.mxu1 %v3634_v2  ;;  %v3706_v2 = vld [vmem:[#allocation7 + $0x110] ss:$8 sps:$4 sm:$0xff]  }
 0x176   : > { %1913 = vmatprep.subr.bf16.mxu1 %v3639_v4  ;;  %v3711_v4 = vld [vmem:[#allocation7 + $0x124] ss:$8 sps:$4 sm:$0xff]  }
 0x179   : > { %1914 = vmatpush1.bf16.msra.mxu1 %v3637_v6 }
 0x17a   : > { %1915 = vmatprep.subr.bf16.mxu1 %v3642_v8  ;;  %v3709_v8 = vld [vmem:[#allocation7 + $0x120] ss:$8 sps:$4 sm:$0xff]  }
 0x17d   : > { %1916 = vmatpush1.bf16.msra.mxu1 %v3640_v9 }
 0x17e   : > { %1917 = vmatprep.subr.bf16.mxu1 %v3648_v10 }
 0x181   : > { %1918 = vmatpush1.bf16.msra.mxu1 %v3646_v11  ;;  %v3714_v11 = vld [vmem:[#allocation7 + $0x134] ss:$8 sps:$4 sm:$0xff]  }
 0x182   : > { %1919 = vmatprep.subr.bf16.mxu1 %v3651_v13 }
 0x185   : > { %1920 = vmatpush1.bf16.msra.mxu1 %v3649_v14  ;;  %v3758_v14 = vld [vmem:[#allocation8 + $0x18] sm:$0xff]  }
 0x186   : > { %1921 = vmatprep.subr.bf16.mxu1 %v3654_v16 }
 0x189   : > { %1922 = vmatpush1.bf16.msra.mxu1 %v3652_v18 }
 0x18a   : > { %3170 = vmatprep.subr.bf16.mxu1 %v3751_v15  ;;  %v3744_v15 = vld [vmem:[#allocation7 + $0x1d4] ss:$8 sps:$4 sm:$0xff]  }
 0x18c   : > { %1924 = vmatmul.mubr.bf16.vlgmr.msra.gmra.mrb[8].mxu1 %v4278_v31  ;;  %v4312_v31 = vld [vmem:[%s4406_s2] sm:$0xf] }
 0x18d   : > { %1933 = vmatprep.mubr.bf16.mxu1 %v4280_v33  ;;  %v584_v33 = vsub.s32 1, %v4306_v28  ;;  %3171 = vmatpush3.bf16.msra.mxu1 %v3752_v43  ;;  %v3742_v43 = vld [vmem:[#allocation7 + $0x1d0] ss:$8 sps:$4 sm:$0xff]  }
 0x18e   : > { %3172 = vmatprep.subr.bf16.mxu1 %v3753_v37  ;;  %v3747_v37 = vld [vmem:[#allocation7 + $0x1e4] ss:$8 sps:$4 sm:$0xff]  }
 0x18f   : > { %v585_v30 = vrot.slane %v4312_v31, %v584_v33 }
 0x191   : > { %3173 = vmatpush3.bf16.msra.mxu1 %v3754_v42 }
 0x192   : > { %3174 = vmatprep.subr.bf16.mxu1 %v3755_v62 }
 0x194   : > { %1934 = vmatmul.mubr.bf16.gmra.mrb[12].mxu1 %v4287_v41  ;;  %v581_v41 = vrot.slane %v4312_v31, %v580_v29 }
 0x195   : > { %3175 = vmatpush3.bf16.msra.mxu1 %v3756_v5 }
 0x196   : > { %3176 = vmatprep.subr.bf16.mxu1 %v3757_v7 }
 0x199   : > { %3177 = vmatpush3.bf16.msra.mxu1 %v3758_v14 }
 0x19a   : > { %3178 = vmatprep.subr.bf16.mxu1 %v3759_v17 }
 0x19f   : > { %v1619_v19 = vpop.f32.mrb[0].mxu1 }
 0x1a0   : > { %v1621_v20 = vpop.f32.mrb[1].mxu1  ;;  %v1620_v32 = vadd.f32 %v1619_v19, %v581_v41  ;;  %v3712_v19 = vld [vmem:[#allocation7 + $0x130] ss:$8 sps:$4 sm:$0xff]  }
 0x1a1   : > { %v1623_v21 = vpop.f32.mrb[2].mxu1  ;;  %v1622_v34 = vadd.f32 %v1621_v20, %v585_v30  ;;  %v3717_v20 = vld [vmem:[#allocation7 + $0x144] ss:$8 sps:$4 sm:$0xff]  }
 0x1a2   : > { %v1625_v22 = vpop.f32.mrb[3].mxu1  ;;  %v1624_v36 = vadd.f32 %v1623_v21, %v581_v41  ;;  %v3760_v21 = vld [vmem:[#allocation8 + $0x20] sm:$0xff]  }
 0x1a3   : > { %v1626_v40 = vadd.f32 %v1625_v22, %v585_v30  ;;  %v3761_v22 = vld [vmem:[#allocation8 + $0x68] sm:$0xff]   ;;  %3179 = vmatpush3.bf16.msra.mxu1 %v3760_v21 }
 0x1a4   : > { %3180 = vmatprep.subr.bf16.mxu1 %v3761_v22 }
 0x1a7   : > { %v1629_v23 = vpop.f32.mrb[4].mxu1 }
 0x1a8   : > { %v1631_v24 = vpop.f32.mrb[5].mxu1  ;;  %v1630_v56 = vadd.f32 %v1629_v23, %v581_v41  ;;  %v3715_v23 = vld [vmem:[#allocation7 + $0x140] ss:$8 sps:$4 sm:$0xff]  }
 0x1a9   : > { %v1633_v25 = vpop.f32.mrb[6].mxu1  ;;  %v1632_v58 = vadd.f32 %v1631_v24, %v585_v30  ;;  %v3718_v30 = vld [vmem:[#allocation7 + $0x150] ss:$8 sps:$4 sm:$0xff]  }
 0x1aa   : > { %v1634_v26 = vpop.f32.mrb[7].mxu1  ;;  %v3720_v25 = vld [vmem:[#allocation7 + $0x154] ss:$8 sps:$4 sm:$0xff]  }
 0x1f0   : > { %v1772_v35 = vpop.f32.mrb[0].mxu0 }
 0x1f1   : > { %v3199_v38 = vadd.f32 %v1772_v35, %v1620_v32  ;;  %v1774_v39 = vpop.f32.mrb[1].mxu0  ;;  %v3723_v32 = vld [vmem:[#allocation7 + $0x164] ss:$8 sps:$4 sm:$0xff]   ;;  %v3726_v35 = vld [vmem:[#allocation7 + $0x174] ss:$8 sps:$4 sm:$0xff]  }
 0x1f2   : > { %v3201_v45 = vadd.f32 %v1774_v39, %v1622_v34  ;;  %v1776_v12 = vpop.f32.mrb[2].mxu0  ;;  %v3721_v34 = vld [vmem:[#allocation7 + $0x160] ss:$8 sps:$4 sm:$0xff]  }
 0x1f3   : > { %v3203_v46 = vadd.f32 %v1776_v12, %v1624_v36  ;;  %v1778_v47 = vpop.f32.mrb[3].mxu0  ;;  %v1993_v49 = vmax.f32 %v3199_v38, 0.0  ;;  %v3724_v36 = vld [vmem:[#allocation7 + $0x170] ss:$8 sps:$4 sm:$0xff]   ;;  %v3729_v38 = vld [vmem:[#allocation7 + $0x184] ss:$8 sps:$4 sm:$0xff]  }
 0x1f4   : > { %v3205_v48 = vadd.f32 %v1778_v47, %v1626_v40  ;;  %v1994_v52 = vmax.f32 %v3201_v45, 0.0  ;;  %v3727_v39 = vld [vmem:[#allocation7 + $0x180] ss:$8 sps:$4 sm:$0xff]   ;;  %v3732_v40 = vld [vmem:[#allocation7 + $0x194] ss:$8 sps:$4 sm:$0xff]  }
 0x1f5   : > { %v1997_v51 = vmax.f32 %v3203_v46, 0.0  ;;  %v3730_v45 = vld [vmem:[#allocation7 + $0x190] ss:$8 sps:$4 sm:$0xff]   ;;  %v3735_v12 = vld [vmem:[#allocation7 + $0x1a4] ss:$8 sps:$4 sm:$0xff]  }
 0x1f6   : > { %v1998_v54 = vmax.f32 %v3205_v48, 0.0  ;;  %v3733_v46 = vld [vmem:[#allocation7 + $0x1a0] ss:$8 sps:$4 sm:$0xff]   ;;  %v3738_v47 = vld [vmem:[#allocation7 + $0x1b4] ss:$8 sps:$4 sm:$0xff]  }
 0x1f7   : > { %v2005_v57 = vpack.c.bf16 %v1997_v51, %v1993_v49  ;;  %v3736_v48 = vld [vmem:[#allocation7 + $0x1b0] ss:$8 sps:$4 sm:$0xff]   ;;  %v3741_v49 = vld [vmem:[#allocation7 + $0x1c4] ss:$8 sps:$4 sm:$0xff]   ;;  %v3739_v51 = vld [vmem:[#allocation7 + $0x1c0] ss:$8 sps:$4 sm:$0xff]  }
 0x1f8   : > { %v2006_v44 = vpack.c.bf16 %v1998_v54, %v1994_v52  ;;  %v1782_v59 = vpop.f32.mrb[4].mxu0  ;;  %v3745_v52 = vld [vmem:[#allocation7 + $0x1e0] ss:$8 sps:$4 sm:$0xff]   ;;  %v3750_v54 = vld [vmem:[#allocation7 + $0x1f4] ss:$8 sps:$4 sm:$0xff]  }
 0x1f9   : > { %v3207_v60 = vadd.f32 %v1782_v59, %v1630_v56  ;;  %v1784_v61 = vpop.f32.mrb[5].mxu0  ;;  %v3748_v56 = vld [vmem:[#allocation7 + $0x1f0] ss:$8 sps:$4 sm:$0xff]  }
 0x1fa   : > { %v3209_v63 = vadd.f32 %v1784_v61, %v1632_v58  ;;  %2441 = vmatprep.mubr.bf16.mxu0 %v2006_v44  ;;  %v1786_v50 = vpop.f32.mrb[6].mxu0  ;;  %v592_v58 = vsub.s32 3, %v4306_v28 }
 0x1fb   : > { %2442 = vmatmul.mubr.bf16.vlgmr.msra.gmra.mrb[16].mxu0 %v2005_v57  ;;  %v1787_v0 = vpop.f32.mrb[7].mxu0  ;;  %v2001_v3 = vmax.f32 %v3207_v60, 0.0  ;;  %v588_v57 = vsub.s32 2, %v4306_v28 }
 0x1fc   : > { %v2002_v1 = vmax.f32 %v3209_v63, 0.0  ;;  %2461 = vmatpush1.bf16.msra.mxu0 %v3703_v53  ;;  %v593_v59 = vrot.slane %v4312_v31, %v592_v58 }
 0x1fd   : > { %2462 = vmatprep.subr.bf16.mxu0 %v3708_v55  ;;  %v2009_v10 = vpack.c.bf16 %v2001_v3, %v2001_v3  ;;  %v589_v44 = vrot.slane %v4312_v31, %v588_v57 }
 0x1fe   : > { %v2010_v6 = vpack.c.bf16 %v2002_v1, %v2002_v1 }
 0x200   : > { %2451 = vmatprep.mubr.bf16.mxu0 %v2010_v6  ;;  %2463 = vmatpush1.bf16.msra.mxu0 %v3706_v2  ;;  %v4321_v9 = vpop.f32.mrb[8].mxu0 }
 0x201   : > { %2464 = vmatprep.subr.bf16.mxu0 %v3711_v4  ;;  %v4323_v13 = vpop.f32.mrb[9].mxu0 }
 0x202   : > { %v4325_v16 = vpop.f32.mrb[10].mxu0 }
 0x203   : > { %2452 = vmatmul.mubr.bf16.gmra.mrb[20].mxu0 %v2009_v10  ;;  %v4327_v18 = vpop.f32.mrb[11].mxu0 }
 0x204   : > { %2465 = vmatpush1.bf16.msra.mxu0 %v3709_v8 }
 0x205   : > { %2466 = vmatprep.subr.bf16.mxu0 %v3714_v11 }
 0x208   : > { %2467 = vmatpush1.bf16.msra.mxu0 %v3712_v19  ;;  %v4329_v24 = vpop.f32.mrb[12].mxu0 }
 0x209   : > { %2468 = vmatprep.subr.bf16.mxu0 %v3717_v20  ;;  %v4331_v26 = vpop.f32.mrb[13].mxu0 }
 0x20a   : > { %v1990_v27 = vpop.f32.mrb[14].mxu0 }
 0x20b   : > { %v1991_v41 = vpop.f32.mrb[15].mxu0  ;;  %v3764_v27 = vld [vmem:[#allocation8 + $0x30] sm:$0xff]  }
 0x20c   : > { %2469 = vmatpush1.bf16.msra.mxu0 %v3715_v23  ;;  %v3762_v23 = vld [vmem:[#allocation8 + $0x28] sm:$0xff]   ;;  %v3765_v41 = vld [vmem:[#allocation8 + $0x78] sm:$0xff]  }
 0x20d   : > { %2470 = vmatprep.subr.bf16.mxu0 %v3720_v25  ;;  %3181 = vmatpush3.bf16.msra.mxu1 %v3762_v23  ;;  %v3763_v25 = vld [vmem:[#allocation8 + $0x70] sm:$0xff]  }
 0x20e   : > { %3182 = vmatprep.subr.bf16.mxu1 %v3763_v25 }
 0x210   : > { %2471 = vmatpush1.bf16.msra.mxu0 %v3718_v30  ;;  %v3766_v30 = vld [vmem:[#allocation8 + $0x38] sm:$0xff]  }
 0x211   : > { %2472 = vmatprep.subr.bf16.mxu0 %v3723_v32  ;;  %3183 = vmatpush3.bf16.msra.mxu1 %v3764_v27 }
 0x212   : > { %3184 = vmatprep.subr.bf16.mxu1 %v3765_v41 }
 0x214   : > { %2473 = vmatpush1.bf16.msra.mxu0 %v3721_v34 }
 0x215   : > { %2474 = vmatprep.subr.bf16.mxu0 %v3726_v35  ;;  %3185 = vmatpush3.bf16.msra.mxu1 %v3766_v30 }
 0x218   : > { %2475 = vmatpush1.bf16.msra.mxu0 %v3724_v36 }
 0x219   : > { %2476 = vmatprep.subr.bf16.mxu0 %v3729_v38 }
 0x21c   : > { %2477 = vmatpush1.bf16.msra.mxu0 %v3727_v39 }
 0x21d   : > { %2478 = vmatprep.subr.bf16.mxu0 %v3732_v40 }
 0x220   : > { %2479 = vmatpush1.bf16.msra.mxu0 %v3730_v45 }
 0x221   : > { %2480 = vmatprep.subr.bf16.mxu0 %v3735_v12 }
 0x224   : > { %2481 = vmatpush1.bf16.msra.mxu0 %v3733_v46 }
 0x225   : > { %2482 = vmatprep.subr.bf16.mxu0 %v3738_v47 }
 0x228   : > { %2483 = vmatpush1.bf16.msra.mxu0 %v3736_v48 }
 0x229   : > { %2484 = vmatprep.subr.bf16.mxu0 %v3741_v49 }
 0x22c   : > { %2485 = vmatpush1.bf16.msra.mxu0 %v3739_v51 }
 0x22d   : > { %2486 = vmatprep.subr.bf16.mxu0 %v3744_v15 }
 0x230   : > { %2487 = vmatpush1.bf16.msra.mxu0 %v3742_v43 }
 0x231   : > { %2488 = vmatprep.subr.bf16.mxu0 %v3747_v37 }
 0x234   : > { %2489 = vmatpush1.bf16.msra.mxu0 %v3745_v52 }
 0x235   : > { %2490 = vmatprep.subr.bf16.mxu0 %v3750_v54 }
 0x238   : > { %2491 = vmatpush1.bf16.msra.mxu0 %v3748_v56 }
 0x25f   : > { %v1925_v53 = vpop.f32.mrb[8].mxu1 }
 0x260   : > { %v3210_v42 = vadd.f32 %v1925_v53, %v589_v44  ;;  %v1927_v60 = vpop.f32.mrb[9].mxu1  ;;  %v3138_v53 = vld [vmem:[%s4410_s6] ss:$0 sm:$0xff] }
 0x261   : > { %v3212_v61 = vadd.f32 %v1927_v60, %v593_v59  ;;  %v1929_v55 = vpop.f32.mrb[10].mxu1 }
 0x262   : > { %v3211_v62 = vadd.f32 %v3210_v42, %v4321_v9  ;;  %v3214_v63 = vadd.f32 %v1929_v55, %v589_v44  ;;  %v1931_v50 = vpop.f32.mrb[11].mxu1 }
 0x263   : > { %v3213_v0 = vadd.f32 %v3212_v61, %v4323_v13  ;;  %v3216_v1 = vadd.f32 %v1931_v50, %v593_v59 }
 0x264   : > { %v3215_v2 = vadd.f32 %v3214_v63, %v4325_v16  ;;  %v1995_v4 = vmax.f32 %v3211_v62, 0.0 }
 0x265   : > { %v3217_v3 = vadd.f32 %v3216_v1, %v4327_v18  ;;  %v1996_v6 = vmax.f32 %v3213_v0, 0.0 }
 0x266   : > { %v1999_v5 = vmax.f32 %v3215_v2, 0.0 }
 0x267   : > { %v2000_v31 = vmax.f32 %v3217_v3, 0.0  ;;  %v1935_v7 = vpop.f32.mrb[12].mxu1 }
 0x268   : > { %v2007_v8 = vpack.c.bf16 %v1999_v5, %v1995_v4  ;;  %v3218_v10 = vadd.f32 %v1935_v7, %v589_v44  ;;  %v1937_v11 = vpop.f32.mrb[13].mxu1 }
 0x269   : > { %v3220_v14 = vadd.f32 %v1937_v11, %v593_v59  ;;  %v1939_v17 = vpop.f32.mrb[14].mxu1  ;;  %v2008_v9 = vpack.c.bf16 %v2000_v31, %v1996_v6 }
 0x26a   : > { %v3219_v19 = vadd.f32 %v3218_v10, %v4329_v24  ;;  %v1940_v20 = vpop.f32.mrb[15].mxu1  ;;  %v2077_v24 = vld [vmem:[%s4408_s4] sm:$0x3] }
 0x26b   : > { %v3221_v13 = vadd.f32 %v3220_v14, %v4331_v26  ;;  %2492 = vmatprep.mubr.bf16.mxu0 %v2008_v9  ;;  %v2082_v26 = vrot.slane %v2077_v24, %v580_v29  ;;  %v2086_v32 = vrot.slane %v2077_v24, %v584_v33 }
 0x26c   : > { %2493 = vmatmul.mubr.bf16.vlgmr.msra.gmra.mrb[16].mxu0 %v2007_v8  ;;  %v2003_v18 = vmax.f32 %v3219_v19, 0.0 }
 0x26d   : > { %v2004_v16 = vmax.f32 %v3221_v13, 0.0 }
 0x26e   : > { %v2011_v22 = vpack.c.bf16 %v2003_v18, %v2003_v18 }
 0x26f   : > { %v2012_v21 = vpack.c.bf16 %v2004_v16, %v2004_v16 }
 0x271   : > { %2502 = vmatprep.mubr.bf16.mxu0 %v2012_v21 }
 0x274   : > { %2503 = vmatmul.mubr.bf16.gmra.mrb[20].mxu0 %v2011_v22 }
 0x33f   : > { %v2494_v34 = vpop.f32.mrb[16].mxu0 }
 0x340   : > { %v3222_v35 = vadd.f32 %v2494_v34, %v2082_v26  ;;  %v2496_v36 = vpop.f32.mrb[17].mxu0 }
 0x341   : > { %v3223_v38 = vadd.f32 %v2496_v36, %v2086_v32  ;;  %v2498_v39 = vpop.f32.mrb[18].mxu0 }
 0x342   : > { %v3224_v40 = vadd.f32 %v2498_v39, %v2082_v26  ;;  %v2500_v45 = vpop.f32.mrb[19].mxu0  ;;  %v2511_v46 = vmax.f32 %v3222_v35, 0.0 }
 0x343   : > { %v3225_v12 = vadd.f32 %v2500_v45, %v2086_v32  ;;  %v2512_v48 = vmax.f32 %v3223_v38, 0.0 }
 0x344   : > { %v2513_v47 = vmax.f32 %v3224_v40, 0.0 }
 0x345   : > { %v2514_v49 = vmax.f32 %v3225_v12, 0.0 }
 0x346   : > { %v2517_v51 = vpack.c.bf16 %v2513_v47, %v2511_v46 }
 0x347   : > { %v2518_v15 = vpack.c.bf16 %v2514_v49, %v2512_v48  ;;  %v2504_v43 = vpop.f32.mrb[20].mxu0 }
 0x348   : > { %v3226_v37 = vadd.f32 %v2504_v43, %v2082_v26  ;;  %v2506_v29 = vpop.f32.mrb[21].mxu0 }
 0x349   : > { %v3227_v52 = vadd.f32 %v2506_v29, %v2086_v32  ;;  %v2508_v28 = vpop.f32.mrb[22].mxu0  ;;  %2688 = vmatprep.mubr.bf16.mxu1 %v2518_v15 }
 0x34a   : > { %v2509_v33 = vpop.f32.mrb[23].mxu0  ;;  %2689 = vmatmul.mubr.bf16.vlgmr.msra.gmra.mrb[16].mxu1 %v2517_v51  ;;  %v2515_v56 = vmax.f32 %v3226_v37, 0.0 }
 0x34b   : > { %v2516_v54 = vmax.f32 %v3227_v52, 0.0 }
 0x34c   : > { %v2519_v58 = vpack.c.bf16 %v2515_v56, %v2515_v56 }
 0x34d   : > { %v2520_v57 = vpack.c.bf16 %v2516_v54, %v2516_v54 }
 0x34f   : > { %2696 = vmatprep.mubr.bf16.mxu1 %v2520_v57 }
 0x352   : > { %2697 = vmatmul.mubr.bf16.gmra.mrb[20].mxu1 %v2519_v58 }
 0x41d   : > { %v3186_v44 = vpop.f32.mrb[16].mxu1 }
 0x41e   : > { %v3187_v59 = vpop.f32.mrb[17].mxu1 }
 0x41f   : > { %v3188_v42 = vadd.f32 %v3187_v59, %v3186_v44  ;;  %v3189_v60 = vpop.f32.mrb[18].mxu1 }
 0x420   : > { %v3190_v61 = vpop.f32.mrb[19].mxu1 }
 0x421   : > { %v3191_v55 = vadd.f32 %v3190_v61, %v3189_v60  ;;  %v2691_v62 = vadd.f32 %v3188_v42, %v3138_v53 }
 0x423   : > { %2704 = vmax.xlane.f32.xlu0 %v2691_v62  ;;  %v2694_v50 = vadd.f32 %v3191_v55, %v3138_v53 }
 0x425   : > { %v3192_v63 = vpop.f32.mrb[20].mxu1 }
 0x426   : > { %v3193_v0 = vpop.f32.mrb[21].mxu1 }
 0x427   : > { %v3194_v1 = vadd.f32 %v3193_v0, %v3192_v63  ;;  %v3195_v2 = vpop.f32.mrb[22].mxu1  ;;  %2706 = vmax.xlane.f32.xlu0 %v2694_v50 }
 0x428   : > { %v3196_v3 = vpop.f32.mrb[23].mxu1 }
 0x429   : > { %v2699_v4 = vadd.f32 %v3194_v1, %v3138_v53 }
 0x42b   : > { %2708 = vmax.xlane.f32.xlu1 %v2699_v4 }
 0x4b0   : > { %v2705_v5 = vpop.xlane.xlu0 %2704 }
 0x4b1   : > { %v2710_v6 = vsub.f32 %v2691_v62, %v2705_v5 }
 0x4b3   : > { %v2713_v31 = vmul.f32 1.442695, %v2710_v6 }
 0x4b4   : > { %v2707_v7 = vpop.xlane.xlu0 %2706 }
 0x4b5   : > { %3767 = vpow2.f32 %v2713_v31  ;;  %v2711_v8 = vsub.f32 %v2694_v50, %v2707_v7 }
 0x4b7   : > { %v2715_v10 = vmul.f32 1.442695, %v2711_v8 }
 0x4b8   : > { %v2709_v11 = vpop.xlane.xlu1 %2708 }
 0x4b9   : > { %3769 = vpow2.f32 %v2715_v10  ;;  %v2712_v14 = vsub.f32 %v2699_v4, %v2709_v11 }
 0x4bb   : > { %v2717_v17 = vmul.f32 1.442695, %v2712_v14 }
 0x4bd   : > { %3771 = vpow2.f32 %v2717_v17 }
 0x4bf   : > { %v3768_v9 = vpop.eup %3767 }
 0x4c0   : > { %2719 = vadd.xlane.f32.xlu1 %v3768_v9 }
 0x4c3   : > { %v3770_v19 = vpop.eup %3769 }
 0x4c4   : > { %2721 = vadd.xlane.f32.xlu0 %v3770_v19 }
 0x4c7   : > { %v3772_v20 = vpop.eup %3771 }
 0x4c8   : > { %2723 = vadd.xlane.f32.xlu1 %v3772_v20 }
 0x54d   : > { %v2720_v13 = vpop.xlane.xlu1 %2719 }
 0x54e   : > { %3773 = vrcp.f32 %v2720_v13 }
 0x551   : > { %v2722_v16 = vpop.xlane.xlu0 %2721 }
 0x552   : > { %3775 = vrcp.f32 %v2722_v16 }
 0x555   : > { %v2724_v18 = vpop.xlane.xlu1 %2723 }
 0x556   : > { %3777 = vrcp.f32 %v2724_v18 }
 0x558   : > { %v3774_v21 = vpop.eup %3773 }
 0x559   : > { %v2728_v23 = vmul.f32 %v3774_v21, %v3768_v9 }
 0x55c   : > { %v3776_v22 = vpop.eup %3775 }
 0x55d   : > { %v2729_v25 = vmul.f32 %v3776_v22, %v3770_v19 }
 0x55f   : > { %v3168_v27 = vpack.c.bf16 %v2729_v25, %v2728_v23 }
 0x560   : > { %v3778_v41 = vpop.eup %3777 }
 0x561   : > { %v2730_v30 = vmul.f32 %v3778_v41, %v3772_v20  ;;  %3169 = vst [vmem:[%s341_s15] sm:$0xff] %v3168_v27  }
 0x563   : > { %v3163_v24 = vpack.c.bf16 %v2730_v30, %v2730_v30 }
 0x565   : > { %2746 = vst [vmem:[%s341_s15 + $0x8] sm:$0xf] %v3163_v24 }
 0x566   : > { %3906 = shalt.err (!%p3903_p4)
}
 0x567   : > { %s3907_s14 = scalar_lea.hbm %s4358_s11, 192  ;;  %s3911_s21 = scalar_lea.hbm %s4411_s7, 384 }
 0x568   : > { %p3908_p9 = scmp.ne.s32.totalorder %s4358_s11, %s3907_s14  ;;  %p3912_p8 = scmp.lt.u32.totalorder %s4358_s11, %s4411_s7 }
 0x569   : > { %p3913_p13 = scmp.lt.u32.totalorder %s3911_s21, %s3907_s14  ;;  %p3915_p10 = scmp.lt.u32.totalorder %s3907_s14, %s4358_s11 }
 0x56a   : > { %p3909_p0 = pnand %p3908_p9, %p4166_p3 }
 0x56b   : > { %p3914_p6 = por %p3913_p13, %p3912_p8 }
 0x56c   : > { %p3910_p11 = pneg %p3909_p0 }
 0x56d   : > { %p3916_p5 = por %p3915_p10, %p3914_p6 }
 0x56f   : > { %p3917_p7 = pnand %p3916_p5, %p3910_p11 }
 0x571   : > { %3920 = shalt.err (!%p3917_p7)
}
 0x572   : > { %s3983_s16 = smov 64   ;;  %s3984_s23 = smov 4  }
 0x573   : > { %3286 = dma.vmem_to_hbm [thread:$0]  (%p4166_p3), %s4360_s10, 192, %s4358_s11, %s2748_s12, %s3983_s16, %s3983_s16, %s3984_s23  }
 0x574 PF: > { %s2776_s28 = sand.u32 1, %s3955_s24   ;;  %p4431_p12 = scmp.ne.s32.totalorder %s4417_s8, 0 }
 0x575   : > { %p4432_p2 = scmp.ge.s32.totalorder %s3967_s27, 2  ;;  %s2777_s30 = scalar_lea.sflag [#allocation4], %s2776_s28 }
 0x577   : > { %p3303_p1 = pnand %p4432_p2, %p4431_p12 }
 0x579   : > { %3950 = dma.done.wait (!%p3303_p1), %s2777_s30, 192  }
 0x57a   : > { %3952 = vsyncadd (!%p3303_p1), %s2777_s30, 4294967104  ;;  %p22_p4 = scmp.ge.s32.totalorder %s4153_s13, 4   ;;  %s4433_s24 = smov %s3959_s25 }
 0x57b   : > { %s4434_s25 = smov %s3963_s26  ;;  %s4435_s26 = smov %s4162_s18 }
 0x57c   : > { %s4436_s27 = smov %s4153_s13  ;;  %24 = sbr.rel (!%p22_p4) target bundleno = 9 (0x9), region = 105 }
 0x583   :  { %2782 = vsyncpa [#allocation3], 1 }
 0x584   :  { %2784 = vsyncpa [#allocation3 + $0x1], 1 }
 0x585   :  { %2785 = vsyncpa [#allocation6], 1 }
 0x586   :  { %2786 = vsyncpa [#allocation9], 1 }
 0x587   :  { %2787 = vsyncpa [#allocation4], 1 }
 0x588   :  { %2789 = vsyncpa [#allocation4 + $0x1], 1 }

</bundles_post_ra>
